<compile_context>
chip_gen: v5e
topology: v5e:2x2
jax: 0.10.0
libtpu: 0.0.40
codegen_flags: <defaults>
</compile_context>

<pallas_src>
import functools
import math

import jax
import jax.numpy as jnp
from jax import lax
from jax.experimental import pallas as pl
from jax.experimental.pallas import tpu as pltpu


# ---------------------------------------------------------------------------
# Kernel
# ---------------------------------------------------------------------------
def mha_fused_kernel(x_ref, wqkv_ref, wproj_ref, bproj_ref, o_ref, *,
                     num_heads, approx_recip):
    """Fully fused causal MHA for one block of Bb batch elements.

    x_ref    : (Bb, T, C)   activations (compute dtype)
    wqkv_ref : (C, 3*C)     fused [Wq*scale | Wk | Wv] ("x @ W" orientation)
    wproj_ref: (C, C)       output projection weight ("x @ W" orientation)
    bproj_ref: (1, C)       output projection bias
    o_ref    : (Bb, T, C)   lane-dense output (heads concatenated + projected)
    """
    Bb, T, C = x_ref.shape
    H = num_heads
    hs = C // H

    w_qkv = wqkv_ref[...]
    cdt = w_qkv.dtype                              # compute dtype (bf16 or f32)

    # One lane-dense (Bb*T, C) @ (C, 3C) MXU matmul for the QKV projection.
    x = x_ref[...].reshape(Bb * T, C)
    qkv = jnp.dot(x, w_qkv, preferred_element_type=jnp.float32)   # (Bb*T, 3C) f32

    # Scale was folded into the Q third of wqkv at pack time.  Cast the matmul
    # operands back to the compute dtype so q@k^T / p@v run at bf16 MXU rate.
    q = qkv[:, :C].astype(cdt)
    k = qkv[:, C:2 * C].astype(cdt)
    v = qkv[:, 2 * C:].astype(cdt)

    # Causal mask built once, shared across batch elements and heads.  Finite
    # large negative is robust (no -inf -> NaN path).
    row = lax.broadcasted_iota(jnp.int32, (T, T), 0)
    col = lax.broadcasted_iota(jnp.int32, (T, T), 1)
    causal = (col <= row)[None]                    # (1, T, T)
    neg_big = jnp.float32(-1e30)

    head_outs = []
    for h in range(H):                             # static unroll (H is small)
        sl = slice(h * hs, (h + 1) * hs)
        qh = q[:, sl].reshape(Bb, T, hs)
        kh = k[:, sl].reshape(Bb, T, hs)
        vh = v[:, sl].reshape(Bb, T, hs)

        # Batched q @ k^T over Bb (no transposed copy of k); f32 accumulation.
        s = lax.dot_general(qh, kh, (((2,), (2,)), ((0,), (0,))),
                            preferred_element_type=jnp.float32)   # (Bb, T, T)
        s = jnp.where(causal, s, neg_big)
        s = s - jnp.max(s, axis=-1, keepdims=True)
        p = jnp.exp(s)                                             # f32, unnormalized
        denom = jnp.sum(p, axis=-1, keepdims=True)
        if approx_recip:
            inv = pl.reciprocal(denom, approx=True)                # EUP slot
        else:
            inv = 1.0 / denom

        # p in [0,1] -> safe to cast for the bf16 p @ v matmul.
        oh = lax.dot_general(p.astype(cdt), vh, (((2,), (1,)), ((0,), (0,))),
                             preferred_element_type=jnp.float32)   # (Bb, T, hs)
        head_outs.append(oh * inv)                 # normalize T*hs, not T*T
        # TODO(synk): dropout on attention weights omitted (eval-mode identity).

    # Concatenate heads along lanes -> lane-dense (Bb*T, C), then one
    # (Bb*T, C) @ (C, C) output-projection matmul.  Fused: no HBM round-trip.
    cat = jnp.concatenate(head_outs, axis=-1).reshape(Bb * T, C).astype(cdt)
    y = jnp.dot(cat, wproj_ref[...], preferred_element_type=jnp.float32)
    y = y + bproj_ref[...].astype(jnp.float32)
    # TODO(synk): dropout after projection omitted (eval-mode identity).
    o_ref[...] = y.reshape(Bb, T, C).astype(o_ref.dtype)


# ---------------------------------------------------------------------------
# One-time parameter packing (hoisted out of the per-call path)
# ---------------------------------------------------------------------------
def pack_mha_params(wq, wk, wv, w_proj, b_proj, *, compute_dtype=jnp.bfloat16):
    """Pack per-head weights into one fused [C, 3C] QKV matrix.

    wq/wk/wv: [H, C, hs] in "x @ W" orientation.  The 1/sqrt(hs) attention
    scale is folded into the Q third.  Casts weights to compute_dtype once.
    """
    H, C, hs = wq.shape
    scale = 1.0 / math.sqrt(hs)

    def stack(w):                                  # [H, C, hs] -> [C, H*hs]
        return jnp.transpose(w, (1, 0, 2)).reshape(C, H * hs)

    wqkv = jnp.concatenate([stack(wq) * scale, stack(wk), stack(wv)], axis=-1)

    if compute_dtype is not None:
        wqkv = wqkv.astype(compute_dtype)
        w_proj = w_proj.astype(compute_dtype)
        b_proj = b_proj.astype(compute_dtype)
    return wqkv, w_proj, b_proj


def _choose_block_batch(B, T, *, target_rows=256):
    """Pick Bb (divisor of B): fill MXU rows (Bb*T >= target) but keep the grid
    length >= 2 when B >= 2 so v7x's two TensorCores both get work."""
    divisors = [d for d in range(1, B + 1) if B % d == 0]
    cands = [d for d in divisors if B // d >= 2] or divisors
    meeting = [d for d in cands if d * T >= target_rows]
    return min(meeting) if meeting else max(cands)


# ---------------------------------------------------------------------------
# Wrapper
# ---------------------------------------------------------------------------
def multi_head_attention(x, wqkv, w_proj, b_proj, *, num_heads,
                         compute_dtype=jnp.bfloat16, approx_recip=True,
                         block_batch=None):
    """x: [B, T, C]; wqkv: [C, 3C] (from pack_mha_params); w_proj: [C, C];
    b_proj: [1, C].  Returns [B, T, C] in the caller's original dtype."""
    out_dtype = x.dtype
    B, T, C = x.shape
    assert wqkv.shape == (C, 3 * C)

    if compute_dtype is not None:
        x = x.astype(compute_dtype)

    Bb = block_batch if block_batch is not None else _choose_block_batch(B, T)
    assert B % Bb == 0
    grid = (B // Bb,)

    kernel = functools.partial(mha_fused_kernel, num_heads=num_heads,
                               approx_recip=approx_recip)

    return pl.pallas_call(
        kernel,
        out_shape=jax.ShapeDtypeStruct((B, T, C), out_dtype),
        grid=grid,
        in_specs=[
            pl.BlockSpec((Bb, T, C), lambda b: (b, 0, 0)),
            # Weights: grid-invariant index maps -> DMA'd once, stay resident.
            # TODO(synk): set pipeline_mode=pl.Buffered(1) on these if VMEM gets
            # tight in a flash / large-C variant.
            pl.BlockSpec((C, 3 * C), lambda b: (0, 0)),
            pl.BlockSpec((C, C), lambda b: (0, 0)),
            pl.BlockSpec((1, C), lambda b: (0, 0)),
        ],
        out_specs=pl.BlockSpec((Bb, T, C), lambda b: (b, 0, 0)),
        compiler_params=pltpu.CompilerParams(
            dimension_semantics=("parallel",),      # shard batch blocks across TCs
            vmem_limit_bytes=32 * 1024 * 1024,      # ample at these sizes; re-derive
                                                    # for Bb-batched/flash variants
        ),
    )(x, wqkv, w_proj, b_proj)


# ---------------------------------------------------------------------------
# Pure-JAX reference (matches the PyTorch forward in eval mode)
# ---------------------------------------------------------------------------
def reference_mha(x, wq, wk, wv, w_proj, b_proj):
    B, T, C = x.shape
    H, _, hs = wq.shape
    outs = []
    mask = jnp.tril(jnp.ones((T, T), dtype=bool))
    for h in range(H):
        q = x @ wq[h]
        k = x @ wk[h]
        v = x @ wv[h]
        s = (q @ jnp.swapaxes(k, -1, -2)) * (hs ** -0.5)
        s = jnp.where(mask, s, -jnp.inf)
        p = jax.nn.softmax(s, axis=-1)
        outs.append(p @ v)
    cat = jnp.concatenate(outs, axis=-1)
    return cat @ w_proj + b_proj


if __name__ == "__main__":
    # Synthetic config (stand-in for checkpoint['config']).  C is a multiple of
    # 128 so the kernel's output is lane-dense; T is sublane-aligned.
    block_size = 16      # T
    n_embd = 128         # C
    num_heads = 4
    head_size = n_embd // num_heads
    B, T, C = 4, block_size, n_embd

    key = jax.random.PRNGKey(0)
    k_x, k_q, k_k, k_v, k_p, k_b = jax.random.split(key, 6)

    x = jax.random.normal(k_x, (B, T, C), dtype=jnp.float32)
    scale = 1.0 / math.sqrt(C)
    wq = jax.random.normal(k_q, (num_heads, C, head_size), jnp.float32) * scale
    wk = jax.random.normal(k_k, (num_heads, C, head_size), jnp.float32) * scale
    wv = jax.random.normal(k_v, (num_heads, C, head_size), jnp.float32) * scale
    w_proj = jax.random.normal(k_p, (C, C), jnp.float32) * scale
    b_proj = jax.random.normal(k_b, (1, C), jnp.float32) * scale

    ref = reference_mha(x, wq, wk, wv, w_proj, b_proj)

    # --- exact path (f32 compute, exact reciprocal): tight check ------------
    wqkv_f32, wp_f32, bp_f32 = pack_mha_params(wq, wk, wv, w_proj, b_proj,
                                               compute_dtype=None)
    out_f32 = multi_head_attention(x, wqkv_f32, wp_f32, bp_f32,
                                   num_heads=num_heads, compute_dtype=None,
                                   approx_recip=False)
    out_f32 = jax.block_until_ready(out_f32)
    assert out_f32.shape == (B, T, C) and out_f32.dtype == x.dtype
    assert jnp.allclose(out_f32, ref, atol=1e-4, rtol=1e-4), "f32 path mismatch"

    # --- production path (bf16 operands, f32 accumulation, approx recip) ----
    wqkv_bf, wp_bf, bp_bf = pack_mha_params(wq, wk, wv, w_proj, b_proj,
                                            compute_dtype=jnp.bfloat16)
    out_bf = multi_head_attention(x, wqkv_bf, wp_bf, bp_bf,
                                  num_heads=num_heads,
                                  compute_dtype=jnp.bfloat16,
                                  approx_recip=True)
    out_bf = jax.block_until_ready(out_bf)
    assert out_bf.shape == (B, T, C) and out_bf.dtype == x.dtype   # stays f32
    assert jnp.allclose(out_bf, ref, atol=3e-2, rtol=3e-2), "bf16 path mismatch"

    print("KERNEL_OK")
</pallas_src>

<mosaic_0001>
module attributes {stable_mosaic.version = 11 : i64} {
  func.func @mha_fused_kernel(%arg0: i32, %arg1: memref<2x16x128xf32, #tpu.memory_space<vmem>>, %arg2: memref<128x384xf32, #tpu.memory_space<vmem>>, %arg3: memref<128x128xf32, #tpu.memory_space<vmem>>, %arg4: memref<1x128xf32, #tpu.memory_space<vmem>>, %arg5: memref<2x16x128xf32, #tpu.memory_space<vmem>>) attributes {dimension_semantics = [#tpu.dimension_semantics<parallel>], iteration_bounds = array<i64: 2>, scalar_prefetch = 0 : i64, scratch_operands = 0 : i64, tpu.core_type = #tpu.core_type<tc>, window_params = [{transform_indices = @transform_0, window_bounds = array<i64: 2, 16, 128>}, {pipeline_mode = #tpu.pipeline_mode<synchronous>, transform_indices = @transform_1, window_bounds = array<i64: 128, 384>}, {pipeline_mode = #tpu.pipeline_mode<synchronous>, transform_indices = @transform_2, window_bounds = array<i64: 128, 128>}, {pipeline_mode = #tpu.pipeline_mode<synchronous>, transform_indices = @transform_3, window_bounds = array<i64: 1, 128>}, {transform_indices = @transform_4, window_bounds = array<i64: 2, 16, 128>}]} {
    %c0 = arith.constant 0 : index
    %c0_0 = arith.constant 0 : index
    %0 = vector.load %arg2[%c0, %c0_0] : memref<128x384xf32, #tpu.memory_space<vmem>>, vector<128x384xf32>
    %c0_1 = arith.constant 0 : index
    %c0_2 = arith.constant 0 : index
    %c0_3 = arith.constant 0 : index
    %1 = vector.load %arg1[%c0_1, %c0_2, %c0_3] : memref<2x16x128xf32, #tpu.memory_space<vmem>>, vector<2x16x128xf32>
    %2 = vector.shape_cast %1 : vector<2x16x128xf32> to vector<32x128xf32>
    %cst = arith.constant dense<0.000000e+00> : vector<32x384xf32>
    %3 = tpu.matmul %2, %0, %cst {dimension_numbers = #tpu.dot_dimension_numbers<[1], [0], [0], [1], [0, 0, 1, 1], [], []>} : vector<32x128xf32>, vector<128x384xf32>, vector<32x384xf32> -> vector<32x384xf32>
    %4 = vector.extract_strided_slice %3 {offsets = [0, 0], sizes = [32, 128], strides = [1, 1]} : vector<32x384xf32> to vector<32x128xf32>
    %5 = vector.extract_strided_slice %3 {offsets = [0, 128], sizes = [32, 128], strides = [1, 1]} : vector<32x384xf32> to vector<32x128xf32>
    %6 = vector.extract_strided_slice %3 {offsets = [0, 256], sizes = [32, 128], strides = [1, 1]} : vector<32x384xf32> to vector<32x128xf32>
    %7 = tpu.iota {dimensions = array<i32: 0>} : vector<16x16xi32>
    %8 = tpu.iota {dimensions = array<i32: 1>} : vector<16x16xi32>
    %9 = arith.cmpi sle, %8, %7 : vector<16x16xi32>
    %10 = vector.shape_cast %9 : vector<16x16xi1> to vector<1x16x16xi1>
    %11 = vector.extract_strided_slice %4 {offsets = [0, 0], sizes = [32, 32], strides = [1, 1]} : vector<32x128xf32> to vector<32x32xf32>
    %12 = vector.shape_cast %11 : vector<32x32xf32> to vector<2x16x32xf32>
    %13 = vector.extract_strided_slice %5 {offsets = [0, 0], sizes = [32, 32], strides = [1, 1]} : vector<32x128xf32> to vector<32x32xf32>
    %14 = vector.shape_cast %13 : vector<32x32xf32> to vector<2x16x32xf32>
    %15 = vector.extract_strided_slice %6 {offsets = [0, 0], sizes = [32, 32], strides = [1, 1]} : vector<32x128xf32> to vector<32x32xf32>
    %16 = vector.shape_cast %15 : vector<32x32xf32> to vector<2x16x32xf32>
    %cst_4 = arith.constant dense<0.000000e+00> : vector<2x16x16xf32>
    %17 = tpu.matmul %12, %14, %cst_4 {dimension_numbers = #tpu.dot_dimension_numbers<[2], [2], [1], [1], [0, 0, 0, 1, 1, 1], [0], [0]>} : vector<2x16x32xf32>, vector<2x16x32xf32>, vector<2x16x16xf32> -> vector<2x16x16xf32>
    %cst_5 = arith.constant -1.000000e+30 : f32
    %18 = vector.shape_cast %10 : vector<1x16x16xi1> to vector<1x16x16xi1>
    %19 = vector.broadcast %18 : vector<1x16x16xi1> to vector<2x16x16xi1>
    %20 = vector.broadcast %cst_5 : f32 to vector<2x16x16xf32>
    %21 = arith.select %19, %17, %20 : vector<2x16x16xi1>, vector<2x16x16xf32>
    %cst_6 = arith.constant dense<0xFF800000> : vector<2x16xf32>
    %22 = vector.multi_reduction <maximumf>, %21, %cst_6 [2] : vector<2x16x16xf32> to vector<2x16xf32>
    %23 = vector.shape_cast %22 : vector<2x16xf32> to vector<2x16x1xf32>
    %24 = vector.broadcast %23 : vector<2x16x1xf32> to vector<2x16x16xf32>
    %25 = arith.subf %21, %24 : vector<2x16x16xf32>
    %26 = math.exp %25 : vector<2x16x16xf32>
    %cst_7 = arith.constant dense<0.000000e+00> : vector<2x16xf32>
    %27 = vector.multi_reduction <add>, %26, %cst_7 [2] : vector<2x16x16xf32> to vector<2x16xf32>
    %28 = vector.shape_cast %27 : vector<2x16xf32> to vector<2x16x1xf32>
    %cst_8 = arith.constant 1.000000e+00 : f32
    %29 = vector.broadcast %cst_8 : f32 to vector<2x16x1xf32>
    %30 = arith.divf %29, %28 : vector<2x16x1xf32>
    %cst_9 = arith.constant dense<0.000000e+00> : vector<2x16x32xf32>
    %31 = tpu.matmul %26, %16, %cst_9 {dimension_numbers = #tpu.dot_dimension_numbers<[2], [1], [1], [2], [0, 0, 0, 1, 1, 2], [0], [0]>} : vector<2x16x16xf32>, vector<2x16x32xf32>, vector<2x16x32xf32> -> vector<2x16x32xf32>
    %32 = vector.broadcast %30 : vector<2x16x1xf32> to vector<2x16x32xf32>
    %33 = arith.mulf %31, %32 : vector<2x16x32xf32>
    %34 = vector.extract_strided_slice %4 {offsets = [0, 32], sizes = [32, 32], strides = [1, 1]} : vector<32x128xf32> to vector<32x32xf32>
    %35 = vector.shape_cast %34 : vector<32x32xf32> to vector<2x16x32xf32>
    %36 = vector.extract_strided_slice %5 {offsets = [0, 32], sizes = [32, 32], strides = [1, 1]} : vector<32x128xf32> to vector<32x32xf32>
    %37 = vector.shape_cast %36 : vector<32x32xf32> to vector<2x16x32xf32>
    %38 = vector.extract_strided_slice %6 {offsets = [0, 32], sizes = [32, 32], strides = [1, 1]} : vector<32x128xf32> to vector<32x32xf32>
    %39 = vector.shape_cast %38 : vector<32x32xf32> to vector<2x16x32xf32>
    %cst_10 = arith.constant dense<0.000000e+00> : vector<2x16x16xf32>
    %40 = tpu.matmul %35, %37, %cst_10 {dimension_numbers = #tpu.dot_dimension_numbers<[2], [2], [1], [1], [0, 0, 0, 1, 1, 1], [0], [0]>} : vector<2x16x32xf32>, vector<2x16x32xf32>, vector<2x16x16xf32> -> vector<2x16x16xf32>
    %cst_11 = arith.constant -1.000000e+30 : f32
    %41 = vector.shape_cast %10 : vector<1x16x16xi1> to vector<1x16x16xi1>
    %42 = vector.broadcast %41 : vector<1x16x16xi1> to vector<2x16x16xi1>
    %43 = vector.broadcast %cst_11 : f32 to vector<2x16x16xf32>
    %44 = arith.select %42, %40, %43 : vector<2x16x16xi1>, vector<2x16x16xf32>
    %cst_12 = arith.constant dense<0xFF800000> : vector<2x16xf32>
    %45 = vector.multi_reduction <maximumf>, %44, %cst_12 [2] : vector<2x16x16xf32> to vector<2x16xf32>
    %46 = vector.shape_cast %45 : vector<2x16xf32> to vector<2x16x1xf32>
    %47 = vector.broadcast %46 : vector<2x16x1xf32> to vector<2x16x16xf32>
    %48 = arith.subf %44, %47 : vector<2x16x16xf32>
    %49 = math.exp %48 : vector<2x16x16xf32>
    %cst_13 = arith.constant dense<0.000000e+00> : vector<2x16xf32>
    %50 = vector.multi_reduction <add>, %49, %cst_13 [2] : vector<2x16x16xf32> to vector<2x16xf32>
    %51 = vector.shape_cast %50 : vector<2x16xf32> to vector<2x16x1xf32>
    %cst_14 = arith.constant 1.000000e+00 : f32
    %52 = vector.broadcast %cst_14 : f32 to vector<2x16x1xf32>
    %53 = arith.divf %52, %51 : vector<2x16x1xf32>
    %cst_15 = arith.constant dense<0.000000e+00> : vector<2x16x32xf32>
    %54 = tpu.matmul %49, %39, %cst_15 {dimension_numbers = #tpu.dot_dimension_numbers<[2], [1], [1], [2], [0, 0, 0, 1, 1, 2], [0], [0]>} : vector<2x16x16xf32>, vector<2x16x32xf32>, vector<2x16x32xf32> -> vector<2x16x32xf32>
    %55 = vector.broadcast %53 : vector<2x16x1xf32> to vector<2x16x32xf32>
    %56 = arith.mulf %54, %55 : vector<2x16x32xf32>
    %57 = vector.extract_strided_slice %4 {offsets = [0, 64], sizes = [32, 32], strides = [1, 1]} : vector<32x128xf32> to vector<32x32xf32>
    %58 = vector.shape_cast %57 : vector<32x32xf32> to vector<2x16x32xf32>
    %59 = vector.extract_strided_slice %5 {offsets = [0, 64], sizes = [32, 32], strides = [1, 1]} : vector<32x128xf32> to vector<32x32xf32>
    %60 = vector.shape_cast %59 : vector<32x32xf32> to vector<2x16x32xf32>
    %61 = vector.extract_strided_slice %6 {offsets = [0, 64], sizes = [32, 32], strides = [1, 1]} : vector<32x128xf32> to vector<32x32xf32>
    %62 = vector.shape_cast %61 : vector<32x32xf32> to vector<2x16x32xf32>
    %cst_16 = arith.constant dense<0.000000e+00> : vector<2x16x16xf32>
    %63 = tpu.matmul %58, %60, %cst_16 {dimension_numbers = #tpu.dot_dimension_numbers<[2], [2], [1], [1], [0, 0, 0, 1, 1, 1], [0], [0]>} : vector<2x16x32xf32>, vector<2x16x32xf32>, vector<2x16x16xf32> -> vector<2x16x16xf32>
    %cst_17 = arith.constant -1.000000e+30 : f32
    %64 = vector.shape_cast %10 : vector<1x16x16xi1> to vector<1x16x16xi1>
    %65 = vector.broadcast %64 : vector<1x16x16xi1> to vector<2x16x16xi1>
    %66 = vector.broadcast %cst_17 : f32 to vector<2x16x16xf32>
    %67 = arith.select %65, %63, %66 : vector<2x16x16xi1>, vector<2x16x16xf32>
    %cst_18 = arith.constant dense<0xFF800000> : vector<2x16xf32>
    %68 = vector.multi_reduction <maximumf>, %67, %cst_18 [2] : vector<2x16x16xf32> to vector<2x16xf32>
    %69 = vector.shape_cast %68 : vector<2x16xf32> to vector<2x16x1xf32>
    %70 = vector.broadcast %69 : vector<2x16x1xf32> to vector<2x16x16xf32>
    %71 = arith.subf %67, %70 : vector<2x16x16xf32>
    %72 = math.exp %71 : vector<2x16x16xf32>
    %cst_19 = arith.constant dense<0.000000e+00> : vector<2x16xf32>
    %73 = vector.multi_reduction <add>, %72, %cst_19 [2] : vector<2x16x16xf32> to vector<2x16xf32>
    %74 = vector.shape_cast %73 : vector<2x16xf32> to vector<2x16x1xf32>
    %cst_20 = arith.constant 1.000000e+00 : f32
    %75 = vector.broadcast %cst_20 : f32 to vector<2x16x1xf32>
    %76 = arith.divf %75, %74 : vector<2x16x1xf32>
    %cst_21 = arith.constant dense<0.000000e+00> : vector<2x16x32xf32>
    %77 = tpu.matmul %72, %62, %cst_21 {dimension_numbers = #tpu.dot_dimension_numbers<[2], [1], [1], [2], [0, 0, 0, 1, 1, 2], [0], [0]>} : vector<2x16x16xf32>, vector<2x16x32xf32>, vector<2x16x32xf32> -> vector<2x16x32xf32>
    %78 = vector.broadcast %76 : vector<2x16x1xf32> to vector<2x16x32xf32>
    %79 = arith.mulf %77, %78 : vector<2x16x32xf32>
    %80 = vector.extract_strided_slice %4 {offsets = [0, 96], sizes = [32, 32], strides = [1, 1]} : vector<32x128xf32> to vector<32x32xf32>
    %81 = vector.shape_cast %80 : vector<32x32xf32> to vector<2x16x32xf32>
    %82 = vector.extract_strided_slice %5 {offsets = [0, 96], sizes = [32, 32], strides = [1, 1]} : vector<32x128xf32> to vector<32x32xf32>
    %83 = vector.shape_cast %82 : vector<32x32xf32> to vector<2x16x32xf32>
    %84 = vector.extract_strided_slice %6 {offsets = [0, 96], sizes = [32, 32], strides = [1, 1]} : vector<32x128xf32> to vector<32x32xf32>
    %85 = vector.shape_cast %84 : vector<32x32xf32> to vector<2x16x32xf32>
    %cst_22 = arith.constant dense<0.000000e+00> : vector<2x16x16xf32>
    %86 = tpu.matmul %81, %83, %cst_22 {dimension_numbers = #tpu.dot_dimension_numbers<[2], [2], [1], [1], [0, 0, 0, 1, 1, 1], [0], [0]>} : vector<2x16x32xf32>, vector<2x16x32xf32>, vector<2x16x16xf32> -> vector<2x16x16xf32>
    %cst_23 = arith.constant -1.000000e+30 : f32
    %87 = vector.shape_cast %10 : vector<1x16x16xi1> to vector<1x16x16xi1>
    %88 = vector.broadcast %87 : vector<1x16x16xi1> to vector<2x16x16xi1>
    %89 = vector.broadcast %cst_23 : f32 to vector<2x16x16xf32>
    %90 = arith.select %88, %86, %89 : vector<2x16x16xi1>, vector<2x16x16xf32>
    %cst_24 = arith.constant dense<0xFF800000> : vector<2x16xf32>
    %91 = vector.multi_reduction <maximumf>, %90, %cst_24 [2] : vector<2x16x16xf32> to vector<2x16xf32>
    %92 = vector.shape_cast %91 : vector<2x16xf32> to vector<2x16x1xf32>
    %93 = vector.broadcast %92 : vector<2x16x1xf32> to vector<2x16x16xf32>
    %94 = arith.subf %90, %93 : vector<2x16x16xf32>
    %95 = math.exp %94 : vector<2x16x16xf32>
    %cst_25 = arith.constant dense<0.000000e+00> : vector<2x16xf32>
    %96 = vector.multi_reduction <add>, %95, %cst_25 [2] : vector<2x16x16xf32> to vector<2x16xf32>
    %97 = vector.shape_cast %96 : vector<2x16xf32> to vector<2x16x1xf32>
    %cst_26 = arith.constant 1.000000e+00 : f32
    %98 = vector.broadcast %cst_26 : f32 to vector<2x16x1xf32>
    %99 = arith.divf %98, %97 : vector<2x16x1xf32>
    %cst_27 = arith.constant dense<0.000000e+00> : vector<2x16x32xf32>
    %100 = tpu.matmul %95, %85, %cst_27 {dimension_numbers = #tpu.dot_dimension_numbers<[2], [1], [1], [2], [0, 0, 0, 1, 1, 2], [0], [0]>} : vector<2x16x16xf32>, vector<2x16x32xf32>, vector<2x16x32xf32> -> vector<2x16x32xf32>
    %101 = vector.broadcast %99 : vector<2x16x1xf32> to vector<2x16x32xf32>
    %102 = arith.mulf %100, %101 : vector<2x16x32xf32>
    %103 = tpu.concatenate %33, %56, %79, %102 in 2 : vector<2x16x32xf32>, vector<2x16x32xf32>, vector<2x16x32xf32>, vector<2x16x32xf32> -> vector<2x16x128xf32>
    %104 = vector.shape_cast %103 : vector<2x16x128xf32> to vector<32x128xf32>
    %c0_28 = arith.constant 0 : index
    %c0_29 = arith.constant 0 : index
    %105 = vector.load %arg3[%c0_28, %c0_29] : memref<128x128xf32, #tpu.memory_space<vmem>>, vector<128x128xf32>
    %cst_30 = arith.constant dense<0.000000e+00> : vector<32x128xf32>
    %106 = tpu.matmul %104, %105, %cst_30 {dimension_numbers = #tpu.dot_dimension_numbers<[1], [0], [0], [1], [0, 0, 1, 1], [], []>} : vector<32x128xf32>, vector<128x128xf32>, vector<32x128xf32> -> vector<32x128xf32>
    %c0_31 = arith.constant 0 : index
    %c0_32 = arith.constant 0 : index
    %107 = vector.load %arg4[%c0_31, %c0_32] : memref<1x128xf32, #tpu.memory_space<vmem>>, vector<1x128xf32>
    %108 = vector.broadcast %107 : vector<1x128xf32> to vector<32x128xf32>
    %109 = arith.addf %106, %108 : vector<32x128xf32>
    %110 = vector.shape_cast %109 : vector<32x128xf32> to vector<2x16x128xf32>
    %c0_33 = arith.constant 0 : index
    %c0_34 = arith.constant 0 : index
    %c0_35 = arith.constant 0 : index
    %111 = vector.load %arg5[%c0_33, %c0_34, %c0_35] : memref<2x16x128xf32, #tpu.memory_space<vmem>>, vector<2x16x128xf32>
    tpu.vector_store %arg5[%c0_33, %c0_34, %c0_35], %110 {strides = array<i32>} : memref<2x16x128xf32, #tpu.memory_space<vmem>>, vector<2x16x128xf32>,
    return
  }
  func.func @transform_0(%arg0: i32) -> (i32, i32, i32) {
    %c0_i32 = arith.constant 0 : i32
    %c0_i32_0 = arith.constant 0 : i32
    %c0_i32_1 = arith.constant 0 : i32
    return %arg0, %c0_i32, %c0_i32_0 : i32, i32, i32
  }
  func.func @transform_1(%arg0: i32) -> (i32, i32) {
    %c0_i32 = arith.constant 0 : i32
    %c0_i32_0 = arith.constant 0 : i32
    %c0_i32_1 = arith.constant 0 : i32
    return %c0_i32, %c0_i32_0 : i32, i32
  }
  func.func @transform_2(%arg0: i32) -> (i32, i32) {
    %c0_i32 = arith.constant 0 : i32
    %c0_i32_0 = arith.constant 0 : i32
    %c0_i32_1 = arith.constant 0 : i32
    return %c0_i32, %c0_i32_0 : i32, i32
  }
  func.func @transform_3(%arg0: i32) -> (i32, i32) {
    %c0_i32 = arith.constant 0 : i32
    %c0_i32_0 = arith.constant 0 : i32
    %c0_i32_1 = arith.constant 0 : i32
    return %c0_i32, %c0_i32_0 : i32, i32
  }
  func.func @transform_4(%arg0: i32) -> (i32, i32, i32) {
    %c0_i32 = arith.constant 0 : i32
    %c0_i32_0 = arith.constant 0 : i32
    %c0_i32_1 = arith.constant 0 : i32
    return %arg0, %c0_i32, %c0_i32_0 : i32, i32, i32
  }
}

</mosaic_0001>

<bundles_post_ra>
// kernel: tpu_custom_call.1
= control target key start
LH: loop header
LB: loop body
LE: loop exit
PB: predicated region body
PF: predicated region fallthrough
CT: control target
= control target key end

     0   :  { %9 = vsyncpa [#allocation3], 0  ;;  %s2640_s0 = inlined_call_operand.hbm [shape: f32[4,16,128], index: 0, kind: input, shape index: {}]   ;;  %s2641_s1 = inlined_call_operand.hbm [shape: f32[128,384], index: 1, kind: input, shape index: {}]   ;;  %s2642_s2 = inlined_call_operand.hbm [shape: f32[128,128], index: 2, kind: input, shape index: {}]   ;;  %s2643_s3 = inlined_call_operand.vmem [shape: f32[1,128], index: 3, kind: input, shape index: {}]   ;;  %s2644_s4 = inlined_call_operand.hbm [shape: f32[4,16,128], index: 4, kind: output, shape index: {}]  }
   0x1   :  { %11 = vsyncpa [#allocation3 + $0x1], 0 }
   0x2   :  { %12 = vsyncpa [#allocation6], 0 }
   0x3   :  { %13 = vsyncpa [#allocation4], 0 }
   0x4   :  { %15 = vsyncpa [#allocation4 + $0x1], 0  ;;  %s2070_s15 = smov 0   ;;  %s2072_s16 = smov 0  }
   0x5   :  { %s2074_s17 = smov 0   ;;  %s2076_s18 = smov 0  }
   0x6 LB: > { %s2091_s19 = sadd.s32 4294967295, %s2032_s18   ;;  %s1622_s20 = sadd.s32 4294967294, %s2032_s18   ;;  %s2032_s18 = sphi %s2076_s18, %s2666_s18   ;;  %s2028_s17 = sphi %s2074_s17, %s2665_s17   ;;  %s2024_s16 = sphi %s2072_s16, %s2664_s16   ;;  %s2020_s15 = sphi %s2070_s15, %s2663_s15  }
   0x7   : > { %p41_p0 = scmp.ne.s32.totalorder %s2024_s16, %s2020_s15  ;;  %p42_p1 = scmp.eq.s32.totalorder %s2091_s19, 0 }
   0x8   : > { %p128_p2 = scmp.eq.s32.totalorder %s2091_s19, 1  ;;  %p134_p3 = scmp.eq.s32.totalorder %s1622_s20, 1 }
   0x9   : > { %p2100_p4 = por %p42_p1, %p41_p0  ;;  %p1623_p5 = scmp.ge.s32.totalorder %s2032_s18, 1 }
   0xa   : > { %p2105_p6 = por %p134_p3, %p41_p0  ;;  %p141_p7 = scmp.lt.s32.totalorder %s2032_s18, 3 }
   0xb   : > { %s152_s25 = sshll.u32 %s2641_s1, 4  ;;  %s2034_s27 = smov [#allocation5]   ;;  %s153_s25 = int_to_ptr.hbm [resolvable:$true] %s152_s25 }
   0xc   : > { %p2113_p8 = pnand %p1623_p5, %p141_p7  ;;  %s154_s28 = sshll.u32 %s2034_s27, 4  ;;  %s155_s28 = int_to_ptr.vmem [resolvable:$true] %s154_s28 }
   0xd   : > { %s166_s5 = sshll.u32 %s2642_s2, 4  ;;  %s2035_s6 = smov 384   ;;  %s167_s5 = int_to_ptr.hbm [resolvable:$true] %s166_s5 }
   0xe   : > { %p1708_p9 = pneg %p2113_p8  ;;  %s2036_s7 = smov 24  }
   0xf   : > { %s2037_s8 = smov [#allocation7]   ;;  %s2038_s10 = smov 128  }
  0x10   : > { %p1709_p10 = pnand %p1708_p9, %p42_p1  ;;  %s168_s9 = sshll.u32 %s2037_s8, 4  ;;  %s169_s9 = int_to_ptr.vmem [resolvable:$true] %s168_s9 }
  0x11   : > { %s2039_s11 = smov 8   ;;  %s2129_s12 = sadd.s32 1, %s2032_s18  }
  0x12   : > { %1711 = dma.hbm_to_vmem [thread:$0]  (!%p1709_p10), %s153_s25, 6144, %s155_s28, [#allocation6], %s2035_s6, %s2035_s6, %s2036_s7  }
  0x13   : > { %1714 = dma.hbm_to_vmem [thread:$0]  (!%p1709_p10), %s167_s5, 2048, %s169_s9, [#allocation6], %s2038_s10, %s2038_s10, %s2039_s11  }
  0x14   : > { %s25_s13 = ssub.s32 %s2032_s18, %s2129_s12  ;;  %s28_s14 = sadd.s32 1, %s2028_s17 }
  0x15   : > { %p26_p12 = scmp.eq.s32.totalorder %s25_s13, 0  ;;  %p35_p13 = scmp.ne.s32.totalorder %s2028_s17, %s2024_s16 }
  0x16   : > { %p36_p0 = scmp.eq.s32.totalorder %s2032_s18, 0  ;;  %p1725_p7 = scmp.lt.s32.totalorder %s2032_s18, 2 }
  0x17   : > { %s2138_s20 = scalar_select %p26_p12, %s2028_s17, %s28_s14  }
  0x18   : > { %p37_p3 = por %p36_p0, %p35_p13  ;;  %p2142_p5 = por %p128_p2, %p35_p13 }
  0x19   : > { %s185_s24 = sand.u32 1, %s2028_s17   ;;  %s1691_s27 = sshll.u32 %s2032_s18, 5 }
  0x1a   : > { %s1627_s25 = sshll.u32 %s185_s24, 5  ;;  %s195_s30 = scalar_lea.hbm %s2640_s0, %s1691_s27 }
  0x1b   : > { %s189_s5 = scalar_lea.vmem [#allocation2], %s1627_s25  ;;  %s196_s7 = sshll.u32 %s195_s30, 4  ;;  %s197_s7 = int_to_ptr.hbm [resolvable:$true] %s196_s7 }
  0x1c   : > { %s198_s6 = sshll.u32 %s189_s5, 4  ;;  %p2152_p9 = pnand %p1725_p7, %p37_p3  ;;  %s199_s6 = int_to_ptr.vmem [resolvable:$true] %s198_s6 }
  0x1d   : > { %s186_s9 = scalar_lea.sflag [#allocation3], %s185_s24  ;;  %s1932_s13 = sshra.s32 %s197_s7, 4  ;;  %s1933_s13 = int_to_ptr.hbm [resolvable:$true] %s1932_s13 }
  0x1e   : > { %s1934_s14 = scalar_lea.hbm %s1933_s13, 32  ;;  %p1936_p10 = pneg %p2152_p9 }
  0x1f   : > { %p1935_p2 = scmp.ne.s32.totalorder %s1933_s13, %s1934_s14  ;;  %s1939_s28 = scalar_lea.hbm %s2640_s0, 64 }
  0x20   : > { %p1940_p0 = scmp.lt.s32.totalorder %s1933_s13, %s2640_s0  ;;  %p1941_p3 = scmp.lt.s32.totalorder %s1939_s28, %s1934_s14 }
  0x21   : > { %p1937_p12 = pnand %p1936_p10, %p1935_p2 }
  0x22   : > { %p1942_p7 = por %p1941_p3, %p1940_p0 }
  0x23   : > { %p1938_p13 = pneg %p1937_p12 }
  0x25   : > { %p1943_p11 = pnand %p1942_p7, %p1938_p13 }
  0x27   : > { %1946 = shalt.err (!%p1943_p11)
}
  0x28   : > { %1718 = dma.hbm_to_vmem [thread:$0]  (!%p2152_p9), %s197_s7, 512, %s199_s6, %s186_s9, %s2038_s10, %s2038_s10, %s2039_s11  }
  0x29   : > { %210 = sbr.rel (%p2113_p8) target bundleno = 1355 (0x54b), region = 36  ;;  %s2172_s24 = sand.u32 (!%p2113_p8), 1, %s2024_s16  }
  0x2a   : > { %s1632_s5 = sshll.u32 (!%p2113_p8), %s2172_s24, 5  ;;  %s213_s13 = scalar_lea.sflag (!%p2113_p8), [#allocation3], %s2172_s24 }
  0x2b   : > { %s2178_s14 = scalar_lea.vmem (!%p2113_p8), [#allocation2], %s1632_s5 }
  0x2e   : > { %2007 = dma.done.wait (%p2100_p4), %s213_s13, 512  }
  0x2f   : > { %2009 = vsyncadd (%p2100_p4), %s213_s13, 4294966784 }
  0x30   : > { %2011 = dma.done.wait (%p42_p1), [#allocation6], 8192  }
  0x31   : > { %2013 = vsyncadd (%p42_p1), [#allocation6], 4294959104  ;;  %v299_v0 = vld [vmem:[#allocation5 + $0x168] sm:$0xff]  ;;  %v296_v1 = vld [vmem:[#allocation5 + $0x150] sm:$0xff]  ;;  %s2040_s21 = smov 96   ;;  %s2041_s26 = smov 64  }
  0x32   : > { %306 = vmatpush.msra.mxu1 %v299_v0  ;;  %v293_v2 = vld [vmem:[#allocation5 + $0x138] sm:$0xff]  ;;  %v290_v3 = vld [vmem:[#allocation5 + $0x120] sm:$0xff]  ;;  %v287_v6 = vld [vmem:[#allocation5 + $0x108] sm:$0xff]  ;;  %vm400_vm0 = vcmask 261120   ;;  %s2042_s10 = smov 32   ;;  %vm479_vm3 = vcmask 130048  }
  0x33   : > { %v301_v4 = vld [vmem:[#allocation5 + $0x178] sm:$0xff]  ;;  %v298_v5 = vld [vmem:[#allocation5 + $0x160] sm:$0xff]  ;;  %v295_v7 = vld [vmem:[#allocation5 + $0x148] sm:$0xff]  ;;  %s251_s7 = scalar_lea.vmem [#allocation8], %s1632_s5  ;;  %s1693_s8 = sshll.u32 %s2091_s19, 5 }
  0x34   : > { %307 = vmatpush.msra.mxu1 %v296_v1  ;;  %364 = vmatpush.msra.mxu2 %v301_v4  ;;  %v284_v8 = vld [vmem:[#allocation5 + $0xf0] sm:$0xff]  ;;  %v281_v10 = vld [vmem:[#allocation5 + $0xd8] sm:$0xff]  ;;  %v278_v12 = vld [vmem:[#allocation5 + $0xc0] sm:$0xff]  ;;  %s1526_s25 = scalar_lea.hbm %s2644_s4, %s1693_s8  ;;  %s1527_s28 = sshll.u32 %s251_s7, 4  ;;  %s1528_s28 = int_to_ptr.vmem [resolvable:$true] %s1527_s28 }
  0x35   : > { %v292_v9 = vld [vmem:[#allocation5 + $0x130] sm:$0xff]  ;;  %v289_v11 = vld [vmem:[#allocation5 + $0x118] sm:$0xff]  ;;  %v286_v13 = vld [vmem:[#allocation5 + $0x100] sm:$0xff]  ;;  %s1529_s29 = sshll.u32 %s1526_s25, 4  ;;  %s1514_s30 = scalar_lea.sflag [#allocation4], %s2172_s24  ;;  %s1530_s29 = int_to_ptr.hbm [resolvable:$true] %s1529_s29 }
  0x36   : > { %308 = vmatpush.msra.mxu1 %v293_v2  ;;  %365 = vmatpush.msra.mxu2 %v298_v5  ;;  %v275_v14 = vld [vmem:[#allocation5 + $0xa8] sm:$0xff]  ;;  %v272_v16 = vld [vmem:[#allocation5 + $0x90] sm:$0xff]  ;;  %v269_v18 = vld [vmem:[#allocation5 + $0x78] sm:$0xff]  ;;  %s1976_s5 = sshra.s32 %s1530_s29, 4  ;;  %s1977_s5 = int_to_ptr.hbm [resolvable:$true] %s1976_s5 }
  0x37   : > { %v283_v15 = vld [vmem:[#allocation5 + $0xe8] sm:$0xff]  ;;  %v280_v17 = vld [vmem:[#allocation5 + $0xd0] sm:$0xff]  ;;  %v277_v19 = vld [vmem:[#allocation5 + $0xb8] sm:$0xff]  ;;  %s1978_s13 = scalar_lea.hbm %s1977_s5, 32  ;;  %p1983_p11 = scmp.lt.s32.totalorder %s1977_s5, %s2644_s4 }
  0x38   : > { %309 = vmatpush.msra.mxu1 %v290_v3  ;;  %366 = vmatpush.msra.mxu2 %v295_v7  ;;  %v266_v20 = vld [vmem:[#allocation5 + $0x60] sm:$0xff]  ;;  %v263_v22 = vld [vmem:[#allocation5 + $0x48] sm:$0xff]  ;;  %v260_v24 = vld [vmem:[#allocation5 + $0x30] sm:$0xff]  ;;  %v393_v3 = vlaneseq  ;;  %p1979_p1 = scmp.ne.s32.totalorder %s1977_s5, %s1978_s13 }
  0x39   : > { %v274_v21 = vld [vmem:[#allocation5 + $0xa0] sm:$0xff]  ;;  %v271_v23 = vld [vmem:[#allocation5 + $0x88] sm:$0xff]  ;;  %v268_v25 = vld [vmem:[#allocation5 + $0x70] sm:$0xff] }
  0x3a   : > { %310 = vmatpush.msra.mxu1 %v287_v6  ;;  %367 = vmatpush.msra.mxu2 %v292_v9  ;;  %v257_v26 = vld [vmem:[#allocation5 + $0x18] sm:$0xff]  ;;  %v254_v28 = vld [vmem:[#allocation5] sm:$0xff]  ;;  %v300_v31 = vld [vmem:[#allocation5 + $0x170] sm:$0xff]  ;;  %v394_v4 = vshrl.u32 %v393_v3, 7  ;;  %v397_v5 = vand.u32 127, %v393_v3  ;;  %p1980_p4 = pnand %p1979_p1, %p2142_p5 }
  0x3b   : > { %v265_v27 = vld [vmem:[#allocation5 + $0x58] sm:$0xff]  ;;  %v262_v29 = vld [vmem:[#allocation5 + $0x40] sm:$0xff]  ;;  %v259_v32 = vld [vmem:[#allocation5 + $0x28] sm:$0xff] }
  0x3c   : > { %311 = vmatpush.msra.mxu1 %v284_v8  ;;  %368 = vmatpush.msra.mxu2 %v289_v11  ;;  %v302_v30 = vld [vmem:[%s2178_s14] sm:$0xff]  ;;  %v297_v33 = vld [vmem:[#allocation5 + $0x158] sm:$0xff]  ;;  %v256_v34 = vld [vmem:[#allocation5 + $0x10] sm:$0xff]  ;;  %vm2240_vm1 = vcmp.le.s32.totalorder %v397_v5, %v394_v4  ;;  %p1981_p8 = pneg %p1980_p4 }
  0x3d   : > { %v294_v35 = vld [vmem:[#allocation5 + $0x140] sm:$0xff]  ;;  %v291_v36 = vld [vmem:[#allocation5 + $0x128] sm:$0xff]  ;;  %v288_v38 = vld [vmem:[#allocation5 + $0x110] sm:$0xff] }
  0x3e   : > { %312 = vmatpush.msra.mxu1 %v281_v10  ;;  %369 = vmatpush.msra.mxu2 %v286_v13  ;;  %v303_v37 = vld [vmem:[%s2178_s14 + $0x8] sm:$0xff]  ;;  %v285_v39 = vld [vmem:[#allocation5 + $0xf8] sm:$0xff]  ;;  %v282_v40 = vld [vmem:[#allocation5 + $0xe0] sm:$0xff] }
  0x3f   : > { %v279_v41 = vld [vmem:[#allocation5 + $0xc8] sm:$0xff]  ;;  %v304_v42 = vld [vmem:[%s2178_s14 + $0x10] sm:$0xff]  ;;  %v273_v44 = vld [vmem:[#allocation5 + $0x98] sm:$0xff] }
  0x40   : > { %313 = vmatpush.msra.mxu1 %v278_v12  ;;  %370 = vmatpush.msra.mxu2 %v283_v15  ;;  %v276_v43 = vld [vmem:[#allocation5 + $0xb0] sm:$0xff]  ;;  %v270_v45 = vld [vmem:[#allocation5 + $0x80] sm:$0xff]  ;;  %v267_v46 = vld [vmem:[#allocation5 + $0x68] sm:$0xff] }
  0x41   : > { %v305_v47 = vld [vmem:[%s2178_s14 + $0x18] sm:$0xff]  ;;  %v264_v48 = vld [vmem:[#allocation5 + $0x50] sm:$0xff]  ;;  %v258_v50 = vld [vmem:[#allocation5 + $0x20] sm:$0xff] }
  0x42   : > { %314 = vmatpush.msra.mxu1 %v275_v14  ;;  %371 = vmatpush.msra.mxu2 %v280_v17  ;;  %v261_v49 = vld [vmem:[#allocation5 + $0x38] sm:$0xff]  ;;  %v255_v51 = vld [vmem:[#allocation5 + $0x8] sm:$0xff] }
  0x44   : > { %315 = vmatpush.msra.mxu1 %v272_v16  ;;  %372 = vmatpush.msra.mxu2 %v277_v19  ;;  %v395_v19 = vadd.s32 8, %v394_v4 }
  0x46   : > { %316 = vmatpush.msra.mxu1 %v269_v18  ;;  %373 = vmatpush.msra.mxu2 %v274_v21  ;;  %vm2256_vm2 = vcmp.le.s32.totalorder %v397_v5, %v395_v19 }
  0x48   : > { %317 = vmatpush.msra.mxu1 %v266_v20  ;;  %374 = vmatpush.msra.mxu2 %v271_v23 }
  0x4a   : > { %318 = vmatpush.msra.mxu1 %v263_v22  ;;  %375 = vmatpush.msra.mxu2 %v268_v25 }
  0x4c   : > { %319 = vmatpush.msra.mxu1 %v260_v24  ;;  %376 = vmatpush.msra.mxu2 %v265_v27 }
  0x4e   : > { %320 = vmatpush.msra.mxu1 %v257_v26  ;;  %377 = vmatpush.msra.mxu2 %v262_v29 }
  0x50   : > { %321 = vmatpush.msra.mxu1 %v254_v28  ;;  %378 = vmatpush.msra.mxu2 %v259_v32 }
  0x51   : > { %322 = vmatmul.f32.vlgmr.msra.gmra.mxu1 %v302_v30 }
  0x52   : > { %335 = vmatpush.msrb.mxu1 %v300_v31  ;;  %379 = vmatpush.msra.mxu2 %v256_v34 }
  0x53   : > { %380 = vmatmul.f32.vlgmr.msra.gmra.mxu2 %v302_v30 }
  0x54   : > { %336 = vmatpush.msrb.mxu1 %v297_v33 }
  0x56   : > { %337 = vmatpush.msrb.mxu1 %v294_v35 }
  0x58   : > { %338 = vmatpush.msrb.mxu1 %v291_v36 }
  0x59   : > { %325 = vmatmul.f32.gmra.mxu1 %v303_v37 }
  0x5a   : > { %339 = vmatpush.msrb.mxu1 %v288_v38 }
  0x5b   : > { %383 = vmatmul.f32.gmra.mxu2 %v303_v37 }
  0x5c   : > { %340 = vmatpush.msrb.mxu1 %v285_v39 }
  0x5e   : > { %341 = vmatpush.msrb.mxu1 %v282_v40 }
  0x60   : > { %342 = vmatpush.msrb.mxu1 %v279_v41 }
  0x61   : > { %328 = vmatmul.f32.gmra.mxu1 %v304_v42 }
  0x62   : > { %343 = vmatpush.msrb.mxu1 %v276_v43 }
  0x63   : > { %386 = vmatmul.f32.gmra.mxu2 %v304_v42 }
  0x64   : > { %344 = vmatpush.msrb.mxu1 %v273_v44 }
  0x66   : > { %345 = vmatpush.msrb.mxu1 %v270_v45 }
  0x68   : > { %346 = vmatpush.msrb.mxu1 %v267_v46 }
  0x69   : > { %331 = vmatmul.f32.gmra.mxu1 %v305_v47 }
  0x6a   : > { %347 = vmatpush.msrb.mxu1 %v264_v48 }
  0x6b   : > { %389 = vmatmul.f32.gmra.mxu2 %v305_v47 }
  0x6c   : > { %348 = vmatpush.msrb.mxu1 %v261_v49 }
  0x6e   : > { %349 = vmatpush.msrb.mxu1 %v258_v50 }
  0x70   : > { %350 = vmatpush.msrb.mxu1 %v255_v51 }
  0x71   : > { %351 = vmatmul.f32.vlgmr.msrb.gmra.mxu1 %v302_v30 }
  0x79   : > { %354 = vmatmul.f32.gmra.mxu1 %v303_v37 }
  0x81   : > { %357 = vmatmul.f32.gmra.mxu1 %v304_v42 }
  0x89   : > { %360 = vmatmul.f32.gmra.mxu1 %v305_v47 }
  0xce   : > { %v323_v52 = vpop.f32.mrf.mxu1 }
  0xcf   : > { %638 = vrot.lane.b32.xlu1 %v323_v52, %s2040_s21 }
  0xd6   : > { %v326_v53 = vpop.f32.mrf.mxu1  ;;  %v381_v56 = vpop.f32.mrf.mxu2 }
  0xd7   : > { %640 = vrot.lane.b32.xlu1 %v326_v53, %s2040_s21 }
  0xde   : > { %v329_v54 = vpop.f32.mrf.mxu1  ;;  %v384_v58 = vpop.f32.mrf.mxu2 }
  0xdf   : > { %v2199_v59 = vpack.i.bf16 %v381_v56, %v384_v58 }
  0xe6   : > { %v2194_v55 = vpop.f32.mrf.mxu1  ;;  %v387_v50 = vpop.f32.mrf.mxu2 }
  0xe7   : > { %679 = vrot.lane.b32.xlu2 %v2194_v55, %s2040_s21 }
  0xee   : > { %v352_v57 = vpop.f32.mrf.mxu1 }
  0xef   : > { %898 = vrot.lane.b32.xlu2 %v352_v57, %s2041_s26 }
  0xf6   : > { %v355_v60 = vpop.f32.mrf.mxu1 }
  0xf7   : > { %1773 = vrot.lane.b32.xlu2 %v2199_v59, %s2040_s21  ;;  %1152 = vrot.lane.b32.xlu1 %v355_v60, %s2042_s10 }
  0xf8   : > { %644 = vrot.lane.b32.xlu0 %v355_v60, %s2040_s21  ;;  %1636 = vmatpush.xpose.msk.msra.mxu3 %vm400_vm0, %v355_v60 }
  0xfc   : > { %1637 = vmatpush.xpose.msk.msra.mxu3 %vm400_vm0, %v352_v57 }
  0xfe   : > { %v2207_v61 = vpop.f32.mrf.mxu1 }
  0xff   : > { %1638 = vmatmul.msk.f32.vlgmr.msra.gmra.mxu3 %vm400_vm0, %v323_v52  ;;  %894 = vrot.lane.b32.xlu2 %v323_v52, %s2041_s26 }
 0x100   : > { %935 = vrot.lane.b32.xlu1 %v2194_v55, %s2041_s26  ;;  %642 = vrot.lane.b32.xlu0 %v352_v57, %s2040_s21 }
 0x106   : > { %v2214_v62 = vpop.f32.mrf.mxu1 }
 0x107   : > { %1639 = vmatmul.msk.f32.gmra.mxu3 %vm400_vm0, %v326_v53  ;;  %681 = vrot.lane.b32.xlu2 %v2207_v61, %s2040_s21 }
 0x108   : > { %677 = vrot.lane.b32.xlu0 %v329_v54, %s2040_s21  ;;  %1640 = vmatpush.xpose.msk.msrb.mxu3 %vm400_vm0, %v2214_v62 }
 0x10c   : > { %1641 = vmatpush.xpose.msk.msrb.mxu3 %vm400_vm0, %v2207_v61 }
 0x10f   : > { %1642 = vmatmul.msk.f32.vlgmr.msrb.gmra.mxu3 %vm400_vm0, %v329_v54  ;;  %683 = vrot.lane.b32.xlu2 %v2214_v62, %s2040_s21 }
 0x110   : > { %596 = vmatpush.msra.mxu3 %v384_v58  ;;  %900 = vrot.lane.b32.xlu0 %v355_v60, %s2041_s26 }
 0x112   : > { %597 = vmatpush.msra.mxu3 %v381_v56 }
 0x117   : > { %1643 = vmatmul.msk.f32.gmra.mxu3 %vm400_vm0, %v2194_v55  ;;  %896 = vrot.lane.b32.xlu2 %v326_v53, %s2041_s26 }
 0x118   : > { %933 = vrot.lane.b32.xlu0 %v329_v54, %s2041_s26 }
 0x11f   : > { %937 = vrot.lane.b32.xlu2 %v2207_v61, %s2041_s26 }
 0x127   : > { %1150 = vrot.lane.b32.xlu2 %v352_v57, %s2042_s10 }
 0x12f   : > { %939 = vrot.lane.b32.xlu2 %v2214_v62, %s2041_s26 }
 0x137   : > { %1146 = vrot.lane.b32.xlu2 %v323_v52, %s2042_s10  ;;  %v390_v52 = vpop.f32.mrf.mxu2 }
 0x138   : > { %625 = vmatpush.msrb.mxu3 %v390_v52 }
 0x13a   : > { %626 = vmatpush.msrb.mxu3 %v387_v50 }
 0x13f   : > { %1148 = vrot.lane.b32.xlu2 %v326_v53, %s2042_s10 }
 0x141   : > { %v680_v63 = vpop.permute.xlu2 %679  ;;  %v639_v12 = vpop.permute.xlu1 %638 }
 0x147   : > { %1185 = vrot.lane.b32.xlu2 %v329_v54, %s2042_s10 }
 0x149   : > { %v899_v0 = vpop.permute.xlu2 %898  ;;  %v641_v15 = vpop.permute.xlu1 %640 }
 0x151   : > { %v1774_v1 = vpop.permute.xlu2 %1773 }
 0x152   : > { %v1775_v26 = vunpack.i.l.bf16 %v1774_v1  ;;  %v1776_v27 = vunpack.i.h.bf16 %v1774_v1 }
 0x154   : > { %844 = vmatpush.msrb.mxu2 %v1775_v26 }
 0x156   : > { %845 = vmatpush.msrb.mxu2 %v1776_v27 }
 0x159   : > { %v895_v2 = vpop.permute.xlu2 %894 }
 0x161   : > { %v682_v6 = vpop.permute.xlu2 %681 }
 0x169   : > { %v684_v8 = vpop.permute.xlu2 %683  ;;  %v1153_v20 = vpop.permute.xlu1 %1152 }
 0x16a   : > { %v645_v9 = vpop.permute.xlu0 %644 }
 0x16b   : > { %1648 = vmatpush.xpose.msk.msra.mxu0 %vm400_vm0, %v645_v9 }
 0x171   : > { %v897_v10 = vpop.permute.xlu2 %896 }
 0x172   : > { %v643_v11 = vpop.permute.xlu0 %642 }
 0x173   : > { %1649 = vmatpush.xpose.msk.msra.mxu0 %vm400_vm0, %v643_v11 }
 0x176   : > { %1650 = vmatmul.msk.f32.vlgmr.msra.gmra.mxu0 %vm400_vm0, %v639_v12 }
 0x177   : > { %1652 = vmatpush.xpose.msk.msrb.mxu0 %vm400_vm0, %v684_v8 }
 0x179   : > { %v938_v13 = vpop.permute.xlu2 %937 }
 0x17a   : > { %v678_v14 = vpop.permute.xlu0 %677 }
 0x17b   : > { %1653 = vmatpush.xpose.msk.msrb.mxu0 %vm400_vm0, %v682_v6 }
 0x17e   : > { %1651 = vmatmul.msk.f32.gmra.mxu0 %vm400_vm0, %v641_v15 }
 0x181   : > { %v1151_v16 = vpop.permute.xlu2 %1150 }
 0x182   : > { %v901_v17 = vpop.permute.xlu0 %900  ;;  %v2250_v18 = vpop.f32.mrf.mxu3 }
 0x183   : > { %1660 = vmatpush.xpose.msk.msra.mxu0 %vm400_vm0, %v901_v17  ;;  %v475_v54 = vsel %vm2240_vm1, %v2250_v18, -1e+30 }
 0x186   : > { %1654 = vmatmul.msk.f32.vlgmr.msrb.gmra.mxu0 %vm400_vm0, %v678_v14 }
 0x187   : > { %1661 = vmatpush.xpose.msk.msra.mxu0 %vm400_vm0, %v899_v0 }
 0x189   : > { %v940_v22 = vpop.permute.xlu2 %939 }
 0x18a   : > { %v433_v23 = vpop.f32.mrf.mxu3  ;;  %1664 = vmatpush.xpose.msk.msra.mxu1 %vm400_vm0, %v940_v22  ;;  %v934_v28 = vpop.permute.xlu0 %933  ;;  %1694 = vmatpush.xpose.msk.msra.mxu2 %vm400_vm0, %v940_v22 }
 0x18b   : > { %1672 = vmatpush.xpose.msk.msrb.mxu0 %vm400_vm0, %v1153_v20  ;;  %v2263_v24 = vsel %vm2256_vm2, %v433_v23, -1e+30 }
 0x18c   : > { %v483_v25 = vsel %vm479_vm3, %v2263_v24, -inf }
 0x18d   : > { %484 = vmax.xlane.f32.xlu2 %v483_v25 }
 0x18e   : > { %1655 = vmatmul.msk.f32.gmra.mxu0 %vm400_vm0, %v680_v63  ;;  %1665 = vmatpush.xpose.msk.msra.mxu1 %vm400_vm0, %v938_v13  ;;  %v936_v63 = vpop.permute.xlu1 %935 }
 0x18f   : > { %1673 = vmatpush.xpose.msk.msrb.mxu0 %vm400_vm0, %v1151_v16  ;;  %1695 = vmatpush.xpose.msk.msra.mxu2 %vm400_vm0, %v938_v13 }
 0x191   : > { %1666 = vmatmul.msk.f32.vlgmr.msra.gmra.mxu1 %vm400_vm0, %v934_v28  ;;  %v1147_v29 = vpop.permute.xlu2 %1146 }
 0x192   : > { %v465_v53 = vpop.f32.mrf.mxu3 }
 0x193   : > { %v2319_v56 = vsel %vm2240_vm1, %v465_v53, -1e+30 }
 0x194   : > { %v486_v60 = vsel %vm479_vm3, %v2319_v56, -inf }
 0x196   : > { %1662 = vmatmul.msk.f32.vlgmr.msra.gmra.mxu0 %vm400_vm0, %v895_v2 }
 0x199   : > { %v1149_v30 = vpop.permute.xlu2 %1148 }
 0x19a   : > { %v468_v57 = vpop.f32.mrf.mxu3 }
 0x19b   : > { %v2323_v58 = vsel %vm2256_vm2, %v468_v57, -1e+30 }
 0x19e   : > { %1663 = vmatmul.msk.f32.gmra.mxu0 %vm400_vm0, %v897_v10 }
 0x1a1   : > { %v1186_v17 = vpop.permute.xlu2 %1185 }
 0x1a6   : > { %1674 = vmatmul.msk.f32.vlgmr.msrb.gmra.mxu0 %vm400_vm0, %v1147_v29 }
 0x1ae   : > { %1675 = vmatmul.msk.f32.gmra.mxu0 %vm400_vm0, %v1149_v30 }
 0x1f3   : > { %v671_v31 = vpop.f32.mrf.mxu0 }
 0x1f4   : > { %v716_v32 = vsel %vm2240_vm1, %v671_v31, -1e+30 }
 0x1f5   : > { %v720_v33 = vsel %vm479_vm3, %v716_v32, -inf }
 0x1f6   : > { %721 = vmax.xlane.f32.xlu1 %v720_v33 }
 0x1fb   : > { %v674_v34 = vpop.f32.mrf.mxu0 }
 0x1fc   : > { %v717_v35 = vsel %vm2256_vm2, %v674_v34, -1e+30 }
 0x1fd   : > { %v723_v36 = vsel %vm479_vm3, %v717_v35, -inf }
 0x1fe   : > { %724 = vmax.xlane.f32.xlu0 %v723_v36 }
 0x200   : > { %v485_v20 = vpop.xlane.xlu2 %484 }
 0x201   : > { %v493_v30 = vsub.f32 %v2263_v24, %v485_v20 }
 0x203   : > { %v710_v37 = vpop.f32.mrf.mxu0 }
 0x204   : > { %v2285_v38 = vsel %vm2240_vm1, %v710_v37, -1e+30 }
 0x205   : > { %v726_v39 = vsel %vm479_vm3, %v2285_v38, -inf }
 0x206   : > { %727 = vmax.xlane.f32.xlu2 %v726_v39 }
 0x20b   : > { %v713_v40 = vpop.f32.mrf.mxu0 }
 0x20c   : > { %v2342_v9 = vsel %vm2256_vm2, %v713_v40, -1e+30 }
 0x20d   : > { %v729_v12 = vsel %vm479_vm3, %v2342_v9, -inf }
 0x20e   : > { %v966_v41 = vpop.f32.mrf.mxu1 }
 0x20f   : > { %1191 = vrot.lane.b32.xlu1 %v2214_v62, %s2042_s10  ;;  %v2293_v42 = vsel %vm2240_vm1, %v966_v41, -1e+30  ;;  %v1777_v62 = vpack.i.bf16 %v387_v50, %v390_v52 }
 0x210   : > { %v982_v43 = vsel %vm479_vm3, %v2293_v42, -inf }
 0x211   : > { %983 = vmax.xlane.f32.xlu2 %v982_v43 }
 0x212   : > { %1189 = vrot.lane.b32.xlu0 %v2207_v61, %s2042_s10  ;;  %v489_v61 = vsel %vm479_vm3, %v2323_v58, -inf }
 0x213   : > { %v927_v44 = vpop.f32.mrf.mxu0 }
 0x214   : > { %v2346_v10 = vsel %vm2240_vm1, %v927_v44, -1e+30 }
 0x215   : > { %v976_v14 = vsel %vm479_vm3, %v2346_v10, -inf }
 0x217   : > { %1187 = vrot.lane.b32.xlu1 %v2194_v55, %s2042_s10  ;;  %v480_v55 = vsel %vm479_vm3, %v475_v54, -inf }
 0x21b   : > { %v930_v45 = vpop.f32.mrf.mxu0 }
 0x21c   : > { %v2303_v46 = vsel %vm2256_vm2, %v930_v45, -1e+30 }
 0x21d   : > { %v979_v47 = vsel %vm479_vm3, %v2303_v46, -inf }
 0x21e   : > { %980 = vmax.xlane.f32.xlu2 %v979_v47 }
 0x223   : > { %v1179_v48 = vpop.f32.mrf.mxu0 }
 0x224   : > { %v2309_v49 = vsel %vm2240_vm1, %v1179_v48, -1e+30 }
 0x225   : > { %v1228_v51 = vsel %vm479_vm3, %v2309_v49, -inf }
 0x226   : > { %1229 = vmax.xlane.f32.xlu2 %v1228_v51 }
 0x22b   : > { %v1182_v13 = vpop.f32.mrf.mxu0 }
 0x22c   : > { %v2356_v16 = vsel %vm2256_vm2, %v1182_v13, -1e+30 }
 0x22d   : > { %v1231_v18 = vsel %vm479_vm3, %v2356_v16, -inf }
 0x23c   : > { %481 = vmax.xlane.f32.xlu0 %v480_v55 }
 0x241   : > { %487 = vmax.xlane.f32.xlu1 %v486_v60 }
 0x244   : > { %490 = vmax.xlane.f32.xlu0 %v489_v61 }
 0x258   : > { %1783 = vrot.lane.b32.xlu0 %v2199_v59, %s2041_s26 }
 0x25a   : > { %1778 = vrot.lane.b32.xlu1 %v1777_v62, %s2040_s21 }
 0x269   : > { %v722_v0 = vpop.xlane.xlu1 %721 }
 0x26a   : > { %v732_v1 = vsub.f32 %v716_v32, %v722_v0  ;;  %v498_v32 = vmul.f32 1.442695, %v493_v30 }
 0x26c   : > { %v736_v2 = vmul.f32 1.442695, %v732_v1 }
 0x26e   : > { %1808 = vpow2.f32 %v736_v2 }
 0x271   : > { %v725_v3 = vpop.xlane.xlu0 %724 }
 0x272   : > { %v733_v4 = vsub.f32 %v717_v35, %v725_v3 }
 0x274   : > { %v2332_v5 = vpop.eup %1808  ;;  %v738_v6 = vmul.f32 1.442695, %v733_v4 }
 0x275   : > { %1656 = vmatmul.msk.f32.vlgmr.msrb.gmra.mxu2 %vm479_vm3, %v2332_v5  ;;  %v744_v7 = vsel %vm479_vm3, %v2332_v5, 0.0 }
 0x276   : > { %1810 = vpow2.f32 %v738_v6 }
 0x279   : > { %v728_v22 = vpop.xlane.xlu2 %727 }
 0x27c   : > { %v2336_v8 = vpop.eup %1810 }
 0x27d   : > { %1657 = vmatmul.msk.f32.gmra.mxu2 %vm479_vm3, %v2336_v8  ;;  %v747_v5 = vsel %vm479_vm3, %v2336_v8, 0.0 }
 0x281   : > { %v1192_v11 = vpop.permute.xlu1 %1191 }
 0x282   : > { %1676 = vmatpush.xpose.msk.msrb.mxu1 %vm400_vm0, %v1192_v11  ;;  %730 = vmax.xlane.f32.xlu0 %v729_v12 }
 0x284   : > { %v1190_v15 = vpop.permute.xlu0 %1189  ;;  %977 = vmax.xlane.f32.xlu1 %v976_v14  ;;  %v2365_v23 = vpop.xlane.xlu2 %983 }
 0x285   : > { %1667 = vmatmul.msk.f32.vlgmr.msra.gmra.mxu2 %vm400_vm0, %v936_v63 }
 0x286   : > { %1677 = vmatpush.xpose.msk.msrb.mxu1 %vm400_vm0, %v1190_v15 }
 0x289   : > { %1678 = vmatmul.msk.f32.vlgmr.msrb.gmra.mxu1 %vm400_vm0, %v1186_v17  ;;  %v1188_v19 = vpop.permute.xlu1 %1187 }
 0x28a   : > { %1232 = vmax.xlane.f32.xlu0 %v1231_v18 }
 0x291   : > { %1679 = vmatmul.msk.f32.gmra.mxu1 %vm400_vm0, %v1188_v19  ;;  %v981_v25 = vpop.xlane.xlu2 %980 }
 0x292   : > { %v989_v1 = vsub.f32 %v2303_v46, %v981_v25 }
 0x294   : > { %v994_v3 = vmul.f32 1.442695, %v989_v1 }
 0x299   : > { %v1230_v29 = vpop.xlane.xlu2 %1229 }
 0x29a   : > { %v1240_v31 = vsub.f32 %v2309_v49, %v1230_v29  ;;  %v734_v49 = vsub.f32 %v2285_v38, %v728_v22 }
 0x29c   : > { %v1244_v35 = vmul.f32 1.442695, %v1240_v31  ;;  %v740_v55 = vmul.f32 1.442695, %v734_v49 }
 0x29d   : > { %1788 = vrot.lane.b32.xlu1 %v1777_v62, %s2041_s26 }
 0x29e   : > { %1798 = vrot.lane.b32.xlu0 %v1777_v62, %s2042_s10 }
 0x2af   : > { %v482_v26 = vpop.xlane.xlu0 %481 }
 0x2b0   : > { %v492_v27 = vsub.f32 %v475_v54, %v482_v26 }
 0x2b2   : > { %v496_v28 = vmul.f32 1.442695, %v492_v27 }
 0x2b4   : > { %1812 = vpow2.f32 %v496_v28  ;;  %v488_v33 = vpop.xlane.xlu1 %487 }
 0x2b5   : > { %1814 = vpow2.f32 %v498_v32  ;;  %v494_v36 = vsub.f32 %v2319_v56, %v488_v33 }
 0x2b6   : > { %1816 = vpow2.f32 %v1244_v35 }
 0x2b7   : > { %v500_v37 = vmul.f32 1.442695, %v494_v36  ;;  %v491_v39 = vpop.xlane.xlu0 %490 }
 0x2b8   : > { %v495_v41 = vsub.f32 %v2323_v58, %v491_v39 }
 0x2b9   : > { %1818 = vpow2.f32 %v500_v37 }
 0x2ba   : > { %v2369_v34 = vpop.eup %1812  ;;  %v502_v44 = vmul.f32 1.442695, %v495_v41 }
 0x2bb   : > { %1644 = vmatmul.msk.f32.vlgmr.msra.gmra.mxu3 %vm479_vm3, %v2369_v34  ;;  %v1815_v40 = vpop.eup %1814 }
 0x2bc   : > { %v2375_v24 = vpop.eup %1816  ;;  %1820 = vpow2.f32 %v502_v44  ;;  %v507_v54 = vsel %vm479_vm3, %v1815_v40, 0.0 }
 0x2bd   : > { %v1252_v43 = vsel %vm479_vm3, %v2375_v24, 0.0  ;;  %1822 = vpow2.f32 %v740_v55 }
 0x2bf   : > { %v2380_v45 = vpop.eup %1818 }
 0x2c2   : > { %v2386_v56 = vpop.eup %1820 }
 0x2c3   : > { %1645 = vmatmul.msk.f32.gmra.mxu3 %vm479_vm3, %v1815_v40  ;;  %v2390_v38 = vpop.eup %1822 }
 0x2c4   : > { %v750_v36 = vsel %vm479_vm3, %v2390_v38, 0.0 }
 0x2c8   : > { %1253 = vadd.xlane.f32.xlu0 %v1252_v43 }
 0x2ca   : > { %v1784_v47 = vpop.permute.xlu0 %1783 }
 0x2cb   : > { %v1785_v48 = vunpack.i.l.bf16 %v1784_v47  ;;  %1646 = vmatmul.msk.f32.vlgmr.msrb.gmra.mxu3 %vm479_vm3, %v2380_v45  ;;  %v1786_v51 = vunpack.i.h.bf16 %v1784_v47 }
 0x2cc   : > { %v1779_v50 = vpop.permute.xlu1 %1778 }
 0x2cd   : > { %1098 = vmatpush.msrb.mxu2 %v1785_v48  ;;  %v1781_v52 = vunpack.i.h.bf16 %v1779_v50  ;;  %v1780_v53 = vunpack.i.l.bf16 %v1779_v50 }
 0x2cf   : > { %1099 = vmatpush.msrb.mxu2 %v1786_v51  ;;  %881 = vmatpush.msra.mxu3 %v1780_v53 }
 0x2d0   : > { %508 = vadd.xlane.f32.xlu0 %v507_v54 }
 0x2d1   : > { %882 = vmatpush.msra.mxu3 %v1781_v52 }
 0x2d3   : > { %1647 = vmatmul.msk.f32.gmra.mxu3 %vm479_vm3, %v2386_v56 }
 0x2db   : > { %1658 = vmatmul.msk.f32.vlgmr.msra.gmra.mxu3 %vm479_vm3, %v2390_v38  ;;  %v504_v38 = vsel %vm479_vm3, %v2369_v34, 0.0 }
 0x2f5   : > { %v731_v57 = vpop.xlane.xlu0 %730 }
 0x2f6   : > { %v735_v58 = vsub.f32 %v2342_v9, %v731_v57  ;;  %v990_v9 = vsub.f32 %v2293_v42, %v2365_v23 }
 0x2f7   : > { %v978_v60 = vpop.xlane.xlu1 %977 }
 0x2f8   : > { %v742_v61 = vmul.f32 1.442695, %v735_v58  ;;  %v988_v62 = vsub.f32 %v2346_v10, %v978_v60  ;;  %v2396_v63 = vpop.f32.mrf.mxu2  ;;  %v996_v17 = vmul.f32 1.442695, %v990_v9 }
 0x2fa   : > { %1824 = vpow2.f32 %v742_v61  ;;  %v992_v0 = vmul.f32 1.442695, %v988_v62 }
 0x2fc   : > { %1826 = vpow2.f32 %v992_v0 }
 0x2fd   : > { %1828 = vpow2.f32 %v994_v3  ;;  %v1233_v13 = vpop.xlane.xlu0 %1232 }
 0x2fe   : > { %1830 = vpow2.f32 %v996_v17  ;;  %v1241_v27 = vsub.f32 %v2356_v16, %v1233_v13 }
 0x300   : > { %v1825_v2 = vpop.eup %1824  ;;  %v2399_v4 = vpop.f32.mrf.mxu2  ;;  %v1246_v29 = vmul.f32 1.442695, %v1241_v27 }
 0x301   : > { %1659 = vmatmul.msk.f32.gmra.mxu3 %vm479_vm3, %v1825_v2  ;;  %v753_v16 = vsel %vm479_vm3, %v1825_v2, 0.0 }
 0x302   : > { %v1827_v6 = vpop.eup %1826  ;;  %1832 = vpow2.f32 %v1246_v29 }
 0x303   : > { %1668 = vmatmul.msk.f32.vlgmr.msrb.gmra.mxu2 %vm479_vm3, %v1827_v6  ;;  %v1829_v15 = vpop.eup %1828  ;;  %v1000_v28 = vsel %vm479_vm3, %v1827_v6, 0.0 }
 0x304   : > { %v1831_v23 = vpop.eup %1830 }
 0x305   : > { %v1006_v32 = vsel %vm479_vm3, %v1831_v23, 0.0 }
 0x306   : > { %v1218_v10 = vpop.f32.mrf.mxu1 }
 0x307   : > { %v1226_v11 = vsel %vm2240_vm1, %v1218_v10, -1e+30 }
 0x308   : > { %v969_v12 = vpop.f32.mrf.mxu2  ;;  %v1234_v46 = vsel %vm479_vm3, %v1226_v11, -inf  ;;  %v1833_v30 = vpop.eup %1832 }
 0x309   : > { %v975_v14 = vsel %vm2256_vm2, %v969_v12, -1e+30  ;;  %1235 = vmax.xlane.f32.xlu1 %v1234_v46  ;;  %v1255_v31 = vsel %vm479_vm3, %v1833_v30, 0.0 }
 0x30a   : > { %v985_v18 = vsel %vm479_vm3, %v975_v14, -inf }
 0x30b   : > { %986 = vmax.xlane.f32.xlu2 %v985_v18  ;;  %1669 = vmatmul.msk.f32.gmra.mxu2 %vm479_vm3, %v1829_v15 }
 0x30e   : > { %v1221_v33 = vpop.f32.mrf.mxu1 }
 0x30f   : > { %v1789_v42 = vpop.permute.xlu1 %1788  ;;  %v2426_v35 = vsel %vm2256_vm2, %v1221_v33, -1e+30 }
 0x310   : > { %v1790_v19 = vunpack.i.l.bf16 %v1789_v42  ;;  %v1799_v20 = vpop.permute.xlu0 %1798  ;;  %v1791_v22 = vunpack.i.h.bf16 %v1789_v42  ;;  %v1237_v8 = vsel %vm479_vm3, %v2426_v35, -inf }
 0x311   : > { %745 = vadd.xlane.f32.xlu1 %v744_v7  ;;  %v1800_v25 = vunpack.i.l.bf16 %v1799_v20  ;;  %v1801_v26 = vunpack.i.h.bf16 %v1799_v20 }
 0x312   : > { %1133 = vmatpush.msrb.mxu3 %v1790_v19 }
 0x314   : > { %1134 = vmatpush.msrb.mxu3 %v1791_v22 }
 0x315   : > { %1670 = vmatmul.msk.f32.vlgmr.msrb.gmra.mxu3 %vm479_vm3, %v1831_v23 }
 0x316   : > { %1385 = vmatpush.msra.mxu3 %v1800_v25 }
 0x318   : > { %1386 = vmatpush.msra.mxu3 %v1801_v26 }
 0x319   : > { %1001 = vadd.xlane.f32.xlu1 %v1000_v28 }
 0x321   : > { %748 = vadd.xlane.f32.xlu1 %v747_v5 }
 0x323   : > { %1793 = vrot.lane.b32.xlu2 %v2199_v59, %s2042_s10  ;;  %v1003_v59 = vsel %vm479_vm3, %v1829_v15, 0.0 }
 0x329   : > { %1256 = vadd.xlane.f32.xlu1 %v1255_v31 }
 0x331   : > { %1007 = vadd.xlane.f32.xlu1 %v1006_v32 }
 0x339   : > { %754 = vadd.xlane.f32.xlu1 %v753_v16 }
 0x33e   : > { %v2449_v33 = vpop.f32.mrf.mxu3 }
 0x34c   : > { %1238 = vmax.xlane.f32.xlu2 %v1237_v8  ;;  %v513_v8 = vsel %vm479_vm3, %v2386_v56, 0.0  ;;  %v510_v56 = vsel %vm479_vm3, %v2380_v45, 0.0 }
 0x354   : > { %1004 = vadd.xlane.f32.xlu2 %v1003_v59 }
 0x35c   : > { %751 = vadd.xlane.f32.xlu2 %v750_v36 }
 0x37c   : > { %v1236_v37 = vpop.xlane.xlu1 %1235 }
 0x37d   : > { %v1242_v39 = vsub.f32 %v1226_v11, %v1236_v37  ;;  %v2455_v37 = vpop.f32.mrf.mxu3 }
 0x37e   : > { %v987_v40 = vpop.xlane.xlu2 %986 }
 0x37f   : > { %v1248_v41 = vmul.f32 1.442695, %v1242_v39  ;;  %v991_v43 = vsub.f32 %v975_v14, %v987_v40 }
 0x381   : > { %1834 = vpow2.f32 %v1248_v41  ;;  %v998_v21 = vmul.f32 1.442695, %v991_v43 }
 0x383   : > { %1836 = vpow2.f32 %v998_v21 }
 0x384   : > { %v746_v44 = vpop.xlane.xlu1 %745 }
 0x385   : > { %1838 = vrcp.f32 %v746_v44  ;;  %v767_v12 = vand.u32 2147483648, %v746_v44  ;;  %vm761_vm9 = vweird.f32 %v746_v44  ;;  %v765_v14 = vand.u32 2147483647, %v746_v44 }
 0x386   : > { %v1794_v47 = vpop.permute.xlu2 %1793  ;;  %v1101_v46 = vpop.f32.mrf.mxu2 }
 0x387   : > { %v1835_v48 = vpop.eup %1834  ;;  %v1795_v49 = vunpack.i.l.bf16 %v1794_v47  ;;  %v1796_v52 = vunpack.i.h.bf16 %v1794_v47  ;;  %v768_v20 = vor.u32 1.1754944e-38, %v767_v12  ;;  %vm766_vm12 = vcmp.eq.f32.partialorder %v765_v14, 8.507059e+37 }
 0x388   : > { %v1258_v50 = vsel %vm479_vm3, %v1835_v48, 0.0 }
 0x389   : > { %v2434_v51 = vpop.eup %1836  ;;  %1259 = vadd.xlane.f32.xlu2 %v1258_v50  ;;  %1350 = vmatpush.msra.mxu2 %v1795_v49  ;;  %v2463_v49 = vpop.xlane.xlu0 %1253 }
 0x38a   : > { %1671 = vmatmul.msk.f32.gmra.mxu3 %vm479_vm3, %v2434_v51 }
 0x38b   : > { %1351 = vmatpush.msra.mxu2 %v1796_v52  ;;  %v1839_v54 = vpop.eup %1838 }
 0x38c   : > { %v1002_v53 = vpop.xlane.xlu1 %1001  ;;  %1680 = vmatmul.msk.f32.vlgmr.msra.gmra.mxu2 %vm479_vm3, %v2375_v24  ;;  %v757_v55 = vmul.f32 %v1839_v54, %v746_v44  ;;  %vm762_vm6 = vweird.f32 %v1839_v54  ;;  %v2461_v44 = vpop.f32.mrf.mxu3 }
 0x38d   : > { %1840 = vrcp.f32 %v1002_v53  ;;  %v1023_v0 = vand.u32 2147483648, %v1002_v53  ;;  %v1021_v2 = vand.u32 2147483647, %v1002_v53  ;;  %vm1017_vm5 = vweird.f32 %v1002_v53  ;;  %vm763_vm10 = vmor %vm761_vm9, %vm762_vm6 }
 0x38e   : > { %v758_v58 = vsub.f32 1.0, %v757_v55 }
 0x38f   : > { %v1024_v34 = vor.u32 1.1754944e-38, %v1023_v0  ;;  %vm1022_vm8 = vcmp.eq.f32.partialorder %v1021_v2, 8.507059e+37 }
 0x390   : > { %v759_v1 = vmul.f32 %v1839_v54, %v758_v58 }
 0x391   : > { %505 = vadd.xlane.f32.xlu2 %v504_v38 }
 0x392   : > { %1682 = vmatmul.msk.f32.vlgmr.msra.gmra.mxu3 %vm479_vm3, %v1835_v48  ;;  %v760_v9 = vadd.f32 %v1839_v54, %v759_v1 }
 0x393   : > { %v1841_v57 = vpop.eup %1840 }
 0x394   : > { %v1013_v60 = vmul.f32 %v1841_v57, %v1002_v53  ;;  %v749_v61 = vpop.xlane.xlu1 %748  ;;  %1681 = vmatmul.msk.f32.gmra.mxu2 %vm479_vm3, %v1833_v30  ;;  %vm1018_vm4 = vweird.f32 %v1841_v57  ;;  %v764_v7 = vsel %vm763_vm10, %v1839_v54, %v760_v9  ;;  %v2465_v45 = vpop.f32.mrf.mxu3 }
 0x395   : > { %1842 = vrcp.f32 %v749_v61  ;;  %vm1019_vm7 = vmor %vm1017_vm5, %vm1018_vm4  ;;  %v782_v18 = vand.u32 2147483648, %v749_v61  ;;  %v780_v19 = vand.u32 2147483647, %v749_v61  ;;  %vm776_vm13 = vweird.f32 %v749_v61 }
 0x396   : > { %v1014_v62 = vsub.f32 1.0, %v1013_v60  ;;  %v769_v25 = vsel %vm766_vm12, %v768_v20, %v764_v7 }
 0x397   : > { %v783_v23 = vor.u32 1.1754944e-38, %v782_v18  ;;  %vm781_vm15 = vcmp.eq.f32.partialorder %v780_v19, 8.507059e+37  ;;  %v890_v28 = vmul.f32 %v2396_v63, %v769_v25 }
 0x398   : > { %v1015_v24 = vmul.f32 %v1841_v57, %v1014_v62  ;;  %v509_v62 = vpop.xlane.xlu0 %508 }
 0x399   : > { %v540_v25 = vand.u32 2147483647, %v509_v62 }
 0x39a   : > { %v1016_v3 = vadd.f32 %v1841_v57, %v1015_v24 }
 0x39b   : > { %v1843_v6 = vpop.eup %1842 }
 0x39c   : > { %v772_v10 = vmul.f32 %v1843_v6, %v749_v61  ;;  %v1020_v11 = vsel %vm1019_vm7, %v1841_v57, %v1016_v3  ;;  %vm777_vm11 = vweird.f32 %v1843_v6  ;;  %v1104_v57 = vpop.f32.mrf.mxu2  ;;  %v884_v2 = vpop.f32.mrf.mxu3 }
 0x39d   : > { %v1025_v13 = vsel %vm1022_vm8, %v1024_v34, %v1020_v11  ;;  %vm778_vm14 = vmor %vm776_vm13, %vm777_vm11  ;;  %vm536_vm11 = vweird.f32 %v509_v62  ;;  %vm1269_vm13 = vweird.f32 %v2463_v49 }
 0x39e   : > { %v773_v15 = vsub.f32 1.0, %v772_v10  ;;  %v1142_v17 = vmul.f32 %v1101_v46, %v1025_v13 }
 0x3a0   : > { %v774_v42 = vmul.f32 %v1843_v6, %v773_v15  ;;  %1418 = vrot.lane.b32.xlu0 %v1142_v17, %s2041_s26 }
 0x3a2   : > { %v775_v22 = vadd.f32 %v1843_v6, %v774_v42 }
 0x3a4   : > { %v779_v26 = vsel %vm778_vm14, %v1843_v6, %v775_v22  ;;  %v2469_v6 = vpop.xlane.xlu1 %1256  ;;  %v2478_v15 = vpop.f32.mrf.mxu3  ;;  %v542_v22 = vand.u32 2147483648, %v509_v62 }
 0x3a5   : > { %v784_v27 = vsel %vm781_vm15, %v783_v23, %v779_v26  ;;  %v1275_v23 = vand.u32 2147483648, %v2463_v49  ;;  %vm541_vm15 = vcmp.eq.f32.partialorder %v540_v25, 8.507059e+37 }
 0x3a6   : > { %v891_v29 = vmul.f32 %v2399_v4, %v784_v27 }
 0x3a8   : > { %v1802_v5 = vpack.i.bf16 %v891_v29, %v890_v28 }
 0x3aa   : > { %1803 = vrot.lane.b32.xlu2 %v1802_v5, %s2042_s10 }
 0x3ac   : > { %v2474_v13 = vpop.xlane.xlu1 %1007  ;;  %v2497_v5 = vpop.f32.mrf.mxu3 }
 0x3bf   : > { %v1239_v30 = vpop.xlane.xlu2 %1238 }
 0x3c0   : > { %v1243_v31 = vsub.f32 %v2426_v35, %v1239_v30  ;;  %v1009_v35 = vsel %vm479_vm3, %v2434_v51, 0.0 }
 0x3c2   : > { %v1250_v32 = vmul.f32 1.442695, %v1243_v31 }
 0x3c4   : > { %1844 = vpow2.f32 %v1250_v32 }
 0x3c7   : > { %v1005_v16 = vpop.xlane.xlu2 %1004 }
 0x3c8   : > { %1846 = vrcp.f32 %v1005_v16  ;;  %v1038_v50 = vand.u32 2147483648, %v1005_v16  ;;  %vm1032_vm2 = vweird.f32 %v1005_v16  ;;  %v1036_v51 = vand.u32 2147483647, %v1005_v16 }
 0x3ca   : > { %v1845_v59 = vpop.eup %1844  ;;  %514 = vadd.xlane.f32.xlu0 %v513_v8  ;;  %v1039_v54 = vor.u32 1.1754944e-38, %v1038_v50  ;;  %v1290_v50 = vand.u32 2147483648, %v2469_v6 }
 0x3cb   : > { %1683 = vmatmul.msk.f32.gmra.mxu3 %vm479_vm3, %v1845_v59  ;;  %v1261_v63 = vsel %vm479_vm3, %v1845_v59, 0.0  ;;  %vm1037_vm3 = vcmp.eq.f32.partialorder %v1036_v51, 8.507059e+37  ;;  %v1273_v59 = vand.u32 2147483647, %v2463_v49 }
 0x3cc   : > { %1262 = vadd.xlane.f32.xlu1 %v1261_v63  ;;  %v543_v63 = vor.u32 1.1754944e-38, %v542_v22 }
 0x3ce   : > { %v1847_v36 = vpop.eup %1846 }
 0x3cf   : > { %v752_v4 = vpop.xlane.xlu2 %751  ;;  %v1028_v39 = vmul.f32 %v1847_v36, %v1005_v16  ;;  %vm1033_vm1 = vweird.f32 %v1847_v36  ;;  %v2504_v16 = vpop.xlane.xlu1 %754 }
 0x3d0   : > { %1848 = vrcp.f32 %v752_v4  ;;  %vm1034_vm4 = vmor %vm1032_vm2, %vm1033_vm1  ;;  %v797_v58 = vand.u32 2147483648, %v752_v4  ;;  %vm791_vm6 = vweird.f32 %v752_v4  ;;  %v795_v61 = vand.u32 2147483647, %v752_v4 }
 0x3d1   : > { %v1029_v40 = vsub.f32 1.0, %v1028_v39  ;;  %1850 = vrcp.f32 %v509_v62  ;;  %vm1274_vm1 = vcmp.eq.f32.partialorder %v1273_v59, 8.507059e+37 }
 0x3d2   : > { %v798_v1 = vor.u32 1.1754944e-38, %v797_v58  ;;  %vm796_vm8 = vcmp.eq.f32.partialorder %v795_v61, 8.507059e+37  ;;  %1852 = vrcp.f32 %v2463_v49 }
 0x3d3   : > { %1010 = vadd.xlane.f32.xlu2 %v1009_v35  ;;  %v1030_v43 = vmul.f32 %v1847_v36, %v1029_v40  ;;  %1854 = vrcp.f32 %v2469_v6 }
 0x3d4   : > { %511 = vadd.xlane.f32.xlu1 %v510_v56 }
 0x3d5   : > { %v1031_v48 = vadd.f32 %v1847_v36, %v1030_v43 }
 0x3d6   : > { %v1849_v41 = vpop.eup %1848 }
 0x3d7   : > { %v787_v21 = vmul.f32 %v1849_v41, %v752_v4  ;;  %v1035_v53 = vsel %vm1034_vm4, %v1847_v36, %v1031_v48  ;;  %vm792_vm5 = vweird.f32 %v1849_v41  ;;  %v1851_v34 = vpop.eup %1850  ;;  %v1276_v36 = vor.u32 1.1754944e-38, %v1275_v23 }
 0x3d8   : > { %v1040_v55 = vsel %vm1037_vm3, %v1039_v54, %v1035_v53  ;;  %vm793_vm7 = vmor %vm791_vm6, %vm792_vm5  ;;  %v1853_v9 = vpop.eup %1852  ;;  %v532_v10 = vmul.f32 %v1851_v34, %v509_v62  ;;  %vm537_vm9 = vweird.f32 %v1851_v34 }
 0x3d9   : > { %v788_v47 = vsub.f32 1.0, %v787_v21  ;;  %v1143_v60 = vmul.f32 %v1104_v57, %v1040_v55  ;;  %v1265_v11 = vmul.f32 %v1853_v9, %v2463_v49  ;;  %v2481_v17 = vpop.eup %1854  ;;  %vm1270_vm10 = vweird.f32 %v1853_v9  ;;  %vm2493_vm12 = vmor %vm536_vm11, %vm537_vm9 }
 0x3da   : > { %v533_v12 = vsub.f32 1.0, %v532_v10  ;;  %v1280_v19 = vmul.f32 %v2481_v17, %v2469_v6  ;;  %vm1271_vm14 = vmor %vm1269_vm13, %vm1270_vm10  ;;  %v1288_v49 = vand.u32 2147483647, %v2469_v6  ;;  %vm1285_vm2 = vweird.f32 %v2481_v17 }
 0x3db   : > { %v789_v52 = vmul.f32 %v1849_v41, %v788_v47  ;;  %v1266_v46 = vsub.f32 1.0, %v1265_v11  ;;  %v1468_v11 = vld [vmem:[#allocation7 + $0x40] sm:$0xff] }
 0x3dc   : > { %v534_v18 = vmul.f32 %v1851_v34, %v533_v12  ;;  %v1281_v30 = vsub.f32 1.0, %v1280_v19  ;;  %vm2553_vm11 = vcmp.eq.f32.partialorder %v1288_v49, 8.507059e+37  ;;  %v1470_v49 = vld [vmem:[#allocation7 + $0x50] sm:$0xff] }
 0x3dd   : > { %v790_v38 = vadd.f32 %v1849_v41, %v789_v52  ;;  %v1267_v42 = vmul.f32 %v1853_v9, %v1266_v46 }
 0x3de   : > { %v535_v7 = vadd.f32 %v1851_v34, %v534_v18  ;;  %v1282_v56 = vmul.f32 %v2481_v17, %v1281_v30 }
 0x3df   : > { %v794_v0 = vsel %vm793_vm7, %v1849_v41, %v790_v38  ;;  %v1268_v28 = vadd.f32 %v1853_v9, %v1267_v42  ;;  %vm1284_vm7 = vweird.f32 %v2469_v6 }
 0x3e0   : > { %v799_v24 = vsel %vm796_vm8, %v798_v1, %v794_v0  ;;  %v539_v32 = vsel %vm2493_vm12, %v1851_v34, %v535_v7  ;;  %v1283_v54 = vadd.f32 %v2481_v17, %v1282_v56  ;;  %vm2549_vm9 = vmor %vm1284_vm7, %vm1285_vm2 }
 0x3e1   : > { %v892_v3 = vmul.f32 %v884_v2, %v799_v24  ;;  %v1272_v4 = vsel %vm1271_vm14, %v1853_v9, %v1268_v28  ;;  %v544_v35 = vsel %vm541_vm15, %v543_v63, %v539_v32  ;;  %v1053_v28 = vand.u32 2147483648, %v2474_v13 }
 0x3e2   : > { %v1277_v43 = vsel %vm1274_vm1, %v1276_v36, %v1272_v4  ;;  %v635_v21 = vmul.f32 %v2455_v37, %v544_v35  ;;  %v1287_v42 = vsel %vm2549_vm9, %v2481_v17, %v1283_v54  ;;  %vm1047_vm15 = vweird.f32 %v2474_v13 }
 0x3e3   : > { %v1054_v63 = vor.u32 1.1754944e-38, %v1053_v28  ;;  %v812_v35 = vand.u32 2147483648, %v2504_v16 }
 0x3e5   : > { %v813_v56 = vor.u32 1.1754944e-38, %v812_v35 }
 0x3eb   : > { %1420 = vrot.lane.b32.xlu2 %v1143_v60, %s2041_s26 }
 0x3f3   : > { %1406 = vrot.lane.b32.xlu2 %v892_v3, %s2042_s10 }
 0x3fc   : > { %v2476_v14 = vpop.xlane.xlu2 %1259 }
 0x3fd   : > { %1856 = vrcp.f32 %v2476_v14  ;;  %vm1299_vm4 = vweird.f32 %v2476_v14  ;;  %v1303_v60 = vand.u32 2147483647, %v2476_v14  ;;  %v1305_v61 = vand.u32 2147483648, %v2476_v14 }
 0x3fe   : > { %1858 = vrcp.f32 %v2474_v13 }
 0x3ff   : > { %v1306_v12 = vor.u32 1.1754944e-38, %v1305_v61  ;;  %vm1304_vm13 = vcmp.eq.f32.partialorder %v1303_v60, 8.507059e+37 }
 0x403   : > { %v2486_v20 = vpop.eup %1856 }
 0x404   : > { %v1295_v26 = vmul.f32 %v2486_v20, %v2476_v14  ;;  %v2491_v27 = vpop.xlane.xlu2 %505  ;;  %v2500_v31 = vpop.eup %1858  ;;  %vm1300_vm3 = vweird.f32 %v2486_v20  ;;  %v1291_v14 = vor.u32 1.1754944e-38, %v1290_v50 }
 0x405   : > { %1860 = vrcp.f32 %v2491_v27  ;;  %v1043_v39 = vmul.f32 %v2500_v31, %v2474_v13  ;;  %v527_v57 = vand.u32 2147483648, %v2491_v27  ;;  %v525_v1 = vand.u32 2147483647, %v2491_v27  ;;  %vm2535_vm6 = vmor %vm1299_vm4, %vm1300_vm3 }
 0x406   : > { %v1296_v8 = vsub.f32 1.0, %v1295_v26  ;;  %1862 = vrcp.f32 %v2504_v16  ;;  %vm521_vm8 = vweird.f32 %v2491_v27  ;;  %vm1048_vm14 = vweird.f32 %v2500_v31 }
 0x407   : > { %v1044_v51 = vsub.f32 1.0, %v1043_v39  ;;  %v528_v6 = vor.u32 1.1754944e-38, %v527_v57  ;;  %vm526_vm12 = vcmp.eq.f32.partialorder %v525_v1, 8.507059e+37  ;;  %v1292_v29 = vsel %vm2553_vm11, %v1291_v14, %v1287_v42  ;;  %vm1049_vm1 = vmor %vm1047_vm15, %vm1048_vm14 }
 0x408   : > { %v1297_v40 = vmul.f32 %v2486_v20, %v1296_v8  ;;  %v1051_v8 = vand.u32 2147483647, %v2474_v13  ;;  %vm806_vm3 = vweird.f32 %v2504_v16  ;;  %v810_v39 = vand.u32 2147483647, %v2504_v16 }
 0x409   : > { %v1045_v2 = vmul.f32 %v2500_v31, %v1044_v51  ;;  %vm1450_vm15 = vcmask 523264  }
 0x40a   : > { %v1298_v38 = vadd.f32 %v2486_v20, %v1297_v40  ;;  %vm1052_vm2 = vcmp.eq.f32.partialorder %v1051_v8, 8.507059e+37 }
 0x40b   : > { %v1861_v41 = vpop.eup %1860  ;;  %v1046_v22 = vadd.f32 %v2500_v31, %v1045_v2 }
 0x40c   : > { %v517_v47 = vmul.f32 %v1861_v41, %v2491_v27  ;;  %v1804_v48 = vpop.permute.xlu2 %1803  ;;  %v2525_v37 = vpop.eup %1862  ;;  %vm522_vm5 = vweird.f32 %v1861_v41  ;;  %v1302_v10 = vsel %vm2535_vm6, %v2486_v20, %v1298_v38  ;;  %vm811_vm6 = vcmp.eq.f32.partialorder %v810_v39, 8.507059e+37 }
 0x40d   : > { %v1806_v52 = vunpack.i.h.bf16 %v1804_v48  ;;  %v2518_v53 = vpop.f32.mrf.mxu3  ;;  %v802_v34 = vmul.f32 %v2525_v37, %v2504_v16  ;;  %vm523_vm10 = vmor %vm521_vm8, %vm522_vm5  ;;  %v1307_v7 = vsel %vm1304_vm13, %v1306_v12, %v1302_v10  ;;  %v1805_v25 = vunpack.i.l.bf16 %v1804_v48  ;;  %v1472_v48 = vld [vmem:[#allocation7 + $0x60] sm:$0xff]  ;;  %v1471_v16 = vld [vmem:[#allocation7 + $0x58] sm:$0xff] }
 0x40e   : > { %v518_v55 = vsub.f32 1.0, %v517_v47  ;;  %v1050_v59 = vsel %vm1049_vm1, %v2500_v31, %v1046_v22  ;;  %vm807_vm4 = vweird.f32 %v2525_v37  ;;  %v1473_v47 = vld [vmem:[#allocation7 + $0x68] sm:$0xff]  ;;  %v1467_v12 = vld [vmem:[#allocation7 + $0x38] sm:$0xff]  ;;  %vm1455_vm1 = vcmask 785408  }
 0x40f   : > { %v1353_v58 = vpop.f32.mrf.mxu2  ;;  %v2531_v62 = vsel %vm400_vm0, %v635_v21, %v1806_v52  ;;  %v803_v23 = vsub.f32 1.0, %v802_v34  ;;  %v1055_v4 = vsel %vm1052_vm2, %v1054_v63, %v1050_v59  ;;  %vm808_vm5 = vmor %vm806_vm3, %vm807_vm4  ;;  %v1474_v21 = vld [vmem:[#allocation7 + $0x70] sm:$0xff]  ;;  %v1469_v10 = vld [vmem:[#allocation7 + $0x48] sm:$0xff] }
 0x410   : > { %v519_v0 = vmul.f32 %v1861_v41, %v518_v55  ;;  %v1394_v24 = vmul.f32 %v1353_v58, %v1277_v43  ;;  %v1144_v13 = vmul.f32 %v2497_v5, %v1055_v4  ;;  %v1475_v43 = vld [vmem:[#allocation7 + $0x78] sm:$0xff] }
 0x411   : > { %1480 = vmatpush.msra.mxu0 %v1475_v43  ;;  %v1463_v22 = vld [vmem:[#allocation7 + $0x18] sm:$0xff] }
 0x412   : > { %v520_v9 = vadd.f32 %v1861_v41, %v519_v0  ;;  %1434 = vrot.lane.b32.xlu1 %v1394_v24, %s2040_s21 }
 0x413   : > { %1481 = vmatpush.msra.mxu0 %v1474_v21 }
 0x414   : > { %v524_v18 = vsel %vm523_vm10, %v1861_v41, %v520_v9 }
 0x415   : > { %v529_v19 = vsel %vm526_vm12, %v528_v6, %v524_v18  ;;  %v1388_v20 = vpop.f32.mrf.mxu3  ;;  %1482 = vmatpush.msra.mxu0 %v1473_v47  ;;  %v1466_v18 = vld [vmem:[#allocation7 + $0x30] sm:$0xff] }
 0x416   : > { %v634_v26 = vmul.f32 %v2449_v33, %v529_v19  ;;  %v1396_v27 = vmul.f32 %v1388_v20, %v1307_v7  ;;  %v804_v33 = vmul.f32 %v2525_v37, %v803_v23  ;;  %v1465_v7 = vld [vmem:[#allocation7 + $0x28] sm:$0xff]  ;;  %v1464_v20 = vld [vmem:[#allocation7 + $0x20] sm:$0xff]  ;;  %v1462_v23 = vld [vmem:[#allocation7 + $0x10] sm:$0xff] }
 0x417   : > { %v1356_v30 = vpop.f32.mrf.mxu2  ;;  %1483 = vmatpush.msra.mxu0 %v1472_v48 }
 0x418   : > { %v2568_v17 = vsel %vm400_vm0, %v634_v26, %v1805_v25  ;;  %v1395_v32 = vmul.f32 %v1356_v30, %v1292_v29  ;;  %1438 = vrot.lane.b32.xlu2 %v1396_v27, %s2040_s21  ;;  %v805_v36 = vadd.f32 %v2525_v37, %v804_v33  ;;  %v1461_v25 = vld [vmem:[#allocation7 + $0x8] sm:$0xff]  ;;  %v1460_v26 = vld [vmem:[#allocation7] sm:$0xff] }
 0x419   : > { %1484 = vmatpush.msra.mxu0 %v1471_v16 }
 0x41a   : > { %1436 = vrot.lane.b32.xlu1 %v1395_v32, %s2040_s21  ;;  %v809_v31 = vsel %vm808_vm5, %v2525_v37, %v805_v36  ;;  %v1419_v32 = vpop.permute.xlu0 %1418 }
 0x41b   : > { %v814_v40 = vsel %vm811_vm6, %v813_v56, %v809_v31  ;;  %1485 = vmatpush.msra.mxu0 %v1470_v49  ;;  %v1451_v33 = vsel %vm1450_vm15, %v2568_v17, %v1419_v32 }
 0x41c   : > { %v893_v41 = vmul.f32 %v2478_v15, %v814_v40 }
 0x41d   : > { %1486 = vmatpush.msra.mxu0 %v1469_v10 }
 0x41f   : > { %1487 = vmatpush.msra.mxu0 %v1468_v11 }
 0x421   : > { %1488 = vmatpush.msra.mxu0 %v1467_v12 }
 0x422   : > { %1422 = vrot.lane.b32.xlu1 %v1144_v13, %s2041_s26 }
 0x423   : > { %1489 = vmatpush.msra.mxu0 %v1466_v18 }
 0x425   : > { %1490 = vmatpush.msra.mxu0 %v1465_v7 }
 0x427   : > { %1491 = vmatpush.msra.mxu0 %v1464_v20 }
 0x429   : > { %1492 = vmatpush.msra.mxu0 %v1463_v22 }
 0x42a   : > { %1408 = vrot.lane.b32.xlu1 %v893_v41, %s2042_s10 }
 0x42b   : > { %1493 = vmatpush.msra.mxu0 %v1462_v23 }
 0x42d   : > { %1494 = vmatpush.msra.mxu0 %v1461_v25 }
 0x42f   : > { %1495 = vmatpush.msra.mxu0 %v1460_v26 }
 0x43d   : > { %v515_v49 = vpop.xlane.xlu0 %514 }
 0x43f   : > { %v1263_v5 = vpop.xlane.xlu1 %1262 }
 0x440   : > { %1864 = vrcp.f32 %v1263_v5  ;;  %v1320_v54 = vand.u32 2147483648, %v1263_v5  ;;  %v1318_v38 = vand.u32 2147483647, %v1263_v5  ;;  %vm1314_vm8 = vweird.f32 %v1263_v5 }
 0x442   : > { %v1321_v60 = vor.u32 1.1754944e-38, %v1320_v54  ;;  %vm1319_vm10 = vcmp.eq.f32.partialorder %v1318_v38, 8.507059e+37  ;;  %v572_v54 = vand.u32 2147483648, %v515_v49 }
 0x444   : > { %v573_v38 = vor.u32 1.1754944e-38, %v572_v54 }
 0x446   : > { %v1865_v50 = vpop.eup %1864  ;;  %v1011_v51 = vpop.xlane.xlu2 %1010 }
 0x447   : > { %v1310_v52 = vmul.f32 %v1865_v50, %v1263_v5  ;;  %1866 = vrcp.f32 %v1011_v51  ;;  %vm1315_vm7 = vweird.f32 %v1865_v50  ;;  %v1068_v2 = vand.u32 2147483648, %v1011_v51  ;;  %v512_v27 = vpop.xlane.xlu1 %511 }
 0x448   : > { %vm1316_vm9 = vmor %vm1314_vm8, %vm1315_vm7  ;;  %v1066_v9 = vand.u32 2147483647, %v1011_v51  ;;  %vm1062_vm12 = vweird.f32 %v1011_v51  ;;  %1868 = vrcp.f32 %v512_v27  ;;  %v557_v36 = vand.u32 2147483648, %v512_v27 }
 0x449   : > { %v1311_v15 = vsub.f32 1.0, %v1310_v52  ;;  %v1069_v46 = vor.u32 1.1754944e-38, %v1068_v2  ;;  %vm551_vm4 = vweird.f32 %v512_v27  ;;  %v555_v35 = vand.u32 2147483647, %v512_v27  ;;  %v1807_v2 = vld [vmem:[%s2643_s3] ss:$0 sm:$0xff] }
 0x44a   : > { %vm1067_vm14 = vcmp.eq.f32.partialorder %v1066_v9, 8.507059e+37  ;;  %v558_v39 = vor.u32 1.1754944e-38, %v557_v36  ;;  %1870 = vrcp.f32 %v515_v49  ;;  %vm566_vm7 = vweird.f32 %v515_v49 }
 0x44b   : > { %v1312_v55 = vmul.f32 %v1865_v50, %v1311_v15  ;;  %vm556_vm5 = vcmp.eq.f32.partialorder %v555_v35, 8.507059e+37 }
 0x44d   : > { %v1867_v37 = vpop.eup %1866  ;;  %v1313_v57 = vadd.f32 %v1865_v50, %v1312_v55 }
 0x44e   : > { %v1058_v58 = vmul.f32 %v1867_v37, %v1011_v51  ;;  %v1391_v24 = vpop.f32.mrf.mxu3  ;;  %vm1063_vm11 = vweird.f32 %v1867_v37  ;;  %v1869_v28 = vpop.eup %1868 }
 0x44f   : > { %v1317_v61 = vsel %vm1316_vm9, %v1865_v50, %v1313_v57  ;;  %vm1064_vm13 = vmor %vm1062_vm12, %vm1063_vm11  ;;  %v547_v29 = vmul.f32 %v1869_v28, %v512_v27  ;;  %v1421_v8 = vpop.permute.xlu2 %1420  ;;  %vm552_vm2 = vweird.f32 %v1869_v28 }
 0x450   : > { %v1059_v0 = vsub.f32 1.0, %v1058_v58  ;;  %v1322_v1 = vsel %vm1319_vm10, %v1321_v60, %v1317_v61  ;;  %vm553_vm3 = vmor %vm551_vm4, %vm552_vm2  ;;  %v1452_v31 = vsel %vm1450_vm15, %v2531_v62, %v1421_v8  ;;  %v1871_v62 = vpop.eup %1870 }
 0x451   : > { %v1397_v3 = vmul.f32 %v1391_v24, %v1322_v1  ;;  %v562_v50 = vmul.f32 %v1871_v62, %v515_v49  ;;  %vm567_vm6 = vweird.f32 %v1871_v62 }
 0x452   : > { %v1060_v34 = vmul.f32 %v1867_v37, %v1059_v0  ;;  %vm568_vm8 = vmor %vm566_vm7, %vm567_vm6 }
 0x453   : > { %1440 = vrot.lane.b32.xlu1 %v1397_v3, %s2040_s21  ;;  %v563_v51 = vsub.f32 1.0, %v562_v50  ;;  %s1982_s21 = scalar_lea.hbm %s2644_s4, 64 }
 0x454   : > { %v1061_v6 = vadd.f32 %v1867_v37, %v1060_v34  ;;  %p1984_p9 = scmp.lt.s32.totalorder %s1982_s21, %s1978_s13 }
 0x455   : > { %v564_v52 = vmul.f32 %v1871_v62, %v563_v51 }
 0x456   : > { %v1065_v14 = vsel %vm1064_vm13, %v1867_v37, %v1061_v6  ;;  %p1985_p2 = por %p1984_p9, %p1983_p11 }
 0x457   : > { %v1070_v42 = vsel %vm1067_vm14, %v1069_v46, %v1065_v14  ;;  %v1407_v41 = vpop.permute.xlu2 %1406  ;;  %v565_v15 = vadd.f32 %v1871_v62, %v564_v52 }
 0x458   : > { %v1145_v19 = vmul.f32 %v2518_v53, %v1070_v42  ;;  %v548_v53 = vsub.f32 1.0, %v547_v29  ;;  %p1986_p10 = pnand %p1985_p2, %p1981_p8 }
 0x459   : > { %v569_v55 = vsel %vm568_vm8, %v1871_v62, %v565_v15 }
 0x45a   : > { %1424 = vrot.lane.b32.xlu2 %v1145_v19, %s2041_s26  ;;  %v549_v30 = vmul.f32 %v1869_v28, %v548_v53 }
 0x45c   : > { %v550_v4 = vadd.f32 %v1869_v28, %v549_v30 }
 0x45e   : > { %v554_v13 = vsel %vm553_vm3, %v1869_v28, %v550_v4 }
 0x45f   : > { %v559_v40 = vsel %vm556_vm5, %v558_v39, %v554_v13 }
 0x460   : > { %v636_v43 = vmul.f32 %v2461_v44, %v559_v40  ;;  %v570_v44 = vand.u32 2147483647, %v515_v49 }
 0x462   : > { %v1448_v21 = vsel %vm400_vm0, %v636_v43, %v1407_v41  ;;  %vm571_vm9 = vcmp.eq.f32.partialorder %v570_v44, 8.507059e+37 }
 0x463   : > { %v574_v57 = vsel %vm571_vm9, %v573_v38, %v569_v55 }
 0x464   : > { %v637_v58 = vmul.f32 %v2465_v45, %v574_v57 }
 0x472   : > { %v1439_v5 = vpop.permute.xlu2 %1438 }
 0x484   : > { %v1435_v59 = vpop.permute.xlu1 %1434 }
 0x485   : > { %v1456_v63 = vsel %vm1455_vm1, %v1451_v33, %v1435_v59 }
 0x486   : > { %1496 = vmatmul.f32.vlgmr.msra.gmra.mxu0 %v1456_v63 }
 0x48c   : > { %v1437_v56 = vpop.permute.xlu1 %1436 }
 0x48d   : > { %v1457_v17 = vsel %vm1455_vm1, %v1452_v31, %v1437_v56 }
 0x48e   : > { %1499 = vmatmul.f32.gmra.mxu0 %v1457_v17 }
 0x494   : > { %v1423_v47 = vpop.permute.xlu1 %1422 }
 0x495   : > { %v1453_v48 = vsel %vm1450_vm15, %v1448_v21, %v1423_v47 }
 0x496   : > { %v1458_v16 = vsel %vm1455_vm1, %v1453_v48, %v1439_v5 }
 0x497   : > { %1502 = vmatmul.f32.gmra.mxu0 %v1458_v16 }
 0x49c   : > { %v1409_v37 = vpop.permute.xlu1 %1408 }
 0x49d   : > { %v1449_v61 = vsel %vm400_vm0, %v637_v58, %v1409_v37 }
 0x4b4   : > { %v1425_v60 = vpop.permute.xlu2 %1424 }
 0x4b5   : > { %v1454_v0 = vsel %vm1450_vm15, %v1449_v61, %v1425_v60 }
 0x4c5   : > { %v1441_v1 = vpop.permute.xlu1 %1440 }
 0x4c6   : > { %v1459_v24 = vsel %vm1455_vm1, %v1454_v0, %v1441_v1 }
 0x4c7   : > { %1505 = vmatmul.f32.gmra.mxu0 %v1459_v24 }
 0x503   : > { %v1497_v3 = vpop.f32.mrf.mxu0 }
 0x504   : > { %v1498_v34 = vadd.f32 %v1807_v2, %v1497_v3 }
 0x506   : > { %1509 = vst [vmem:[%s251_s7] sm:$0xff] %v1498_v34 }
 0x50b   : > { %v1500_v45 = vpop.f32.mrf.mxu0 }
 0x50c   : > { %v1501_v9 = vadd.f32 %v1807_v2, %v1500_v45 }
 0x50e   : > { %1510 = vst [vmem:[%s251_s7 + $0x8] sm:$0xff] %v1501_v9 }
 0x514   : > { %v1503_v10 = vpop.f32.mrf.mxu0 }
 0x515   : > { %v1504_v11 = vadd.f32 %v1807_v2, %v1503_v10 }
 0x517   : > { %1511 = vst [vmem:[%s251_s7 + $0x10] sm:$0xff] %v1504_v11 }
 0x544   : > { %v1506_v6 = vpop.f32.mrf.mxu0 }
 0x545   : > { %v1507_v12 = vadd.f32 %v1807_v2, %v1506_v6 }
 0x547   : > { %1512 = vst [vmem:[%s251_s7 + $0x18] sm:$0xff] %v1507_v12 }
 0x548   : > { %1989 = shalt.err (!%p1986_p10)
}
 0x549   : > { %s2043_s24 = smov 128   ;;  %s2044_s11 = smov 8  }
 0x54a   : > { %1706 = dma.vmem_to_hbm [thread:$0]  (%p2142_p5), %s1528_s28, 512, %s1530_s29, %s1514_s30, %s2043_s24, %s2043_s24, %s2044_s11  }
 0x54b PF: > { %s1544_s6 = sand.u32 1, %s2020_s15   ;;  %p2662_p12 = scmp.ge.s32.totalorder %s2032_s18, 2 }
 0x54c   : > { %s1545_s7 = scalar_lea.sflag [#allocation4], %s1544_s6 }
 0x54d   : > { %p1720_p13 = pnand %p2662_p12, %p2105_p6 }
 0x54f   : > { %p1721_p0 = pneg %p1720_p13 }
 0x551   : > { %2015 = dma.done.wait (%p1721_p0), %s1545_s7, 512  }
 0x552   : > { %2017 = vsyncadd (%p1721_p0), %s1545_s7, 4294966784  ;;  %p18_p3 = scmp.ge.s32.totalorder %s2129_s12, 4   ;;  %s2663_s15 = smov %s2024_s16 }
 0x553   : > { %s2664_s16 = smov %s2028_s17  ;;  %s2665_s17 = smov %s2138_s20 }
 0x554   : > { %s2666_s18 = smov %s2129_s12  ;;  %20 = sbr.rel (!%p18_p3) target bundleno = 6 (0x6), region = 89 }
 0x559   :  { %1551 = vsyncpa [#allocation3], 1 }
 0x55a   :  { %1553 = vsyncpa [#allocation3 + $0x1], 1 }
 0x55b   :  { %1554 = vsyncpa [#allocation6], 1 }
 0x55c   :  { %1555 = vsyncpa [#allocation4], 1 }
 0x55d   :  { %1557 = vsyncpa [#allocation4 + $0x1], 1 }

</bundles_post_ra>
